<compile_context>
chip_gen: v7x
topology: tpu7x:2x2x1
jax: 0.10.0
libtpu: 0.0.40
codegen_flags: <defaults>
</compile_context>

<pallas_src>
import functools

import jax
import jax.numpy as jnp
from jax import lax
from jax.experimental import pallas as pl
from jax.experimental.pallas import tpu as pltpu


def lstm_cloud_kernel(
    xw1_ref,          # (T, TB, 4H)   precomputed x @ W_ih1 + (b_ih1 + b_hh1)
    whh1_ref,         # (H, 4H)
    wih2_ref,         # (H, 4H)
    whh2_ref,         # (H, 4H)
    b2_ref,           # (1, 4H)       = b_ih2 + b_hh2
    whead_ref,        # (H, HEAD_N)   fused fc1*fc2*fc3, zero-padded to 128 lanes
    bhead_ref,        # (1, HEAD_N)   fused head bias, zero-padded
    out_ref,          # (TB, HEAD_N)
    *,
    hidden_size,
):
    T, B, _ = xw1_ref.shape
    H = hidden_size

    whh1 = whh1_ref[...]
    wih2 = wih2_ref[...]
    whh2 = whh2_ref[...]
    # Hoisted broadcasts / constants (JAX does not CSE broadcast_in_dim or iota
    # inside the loop).
    b2b = jnp.broadcast_to(b2_ref[...], (B, 4 * H))
    lane = lax.broadcasted_iota(jnp.int32, (B, 4 * H), 1)
    g_lane = (lane >= 2 * H) & (lane < 3 * H)   # lanes holding the "g" gate

    def cell(gates, c):
        # 2 EUP pushes on the full (B, 4H) gate vreg instead of 4 on 32-lane
        # slices; per-gate activation picked with a precomputed lane mask.
        sig = jax.nn.sigmoid(gates)
        th = jnp.tanh(gates)
        act = jnp.where(g_lane, th, sig)
        i_g = act[:, 0 * H:1 * H]
        f_g = act[:, 1 * H:2 * H]
        g_g = act[:, 2 * H:3 * H]
        o_g = act[:, 3 * H:4 * H]
        c_new = f_g * c + i_g * g_g
        h_new = o_g * jnp.tanh(c_new)
        return h_new, c_new

    def step(t, carry):
        h1, c1, h2, c2 = carry
        # Layer-2 recurrent half first: depends only on step t-1 state, so it
        # overlaps the layer-1 matmul + cell chain (off the serial path).
        rec2 = jnp.dot(h2, whh2, preferred_element_type=jnp.float32) + b2b
        # Layer 1: only the recurrent matmul is on the serial path.
        g1 = jnp.dot(h1, whh1, preferred_element_type=jnp.float32) + xw1_ref[t]
        h1n, c1n = cell(g1, c1)
        # Layer 2 input half (inter-layer dropout p=0.2 is identity in eval).
        g2 = jnp.dot(h1n, wih2, preferred_element_type=jnp.float32) + rec2
        h2n, c2n = cell(g2, c2)
        return (h1n, c1n, h2n, c2n)

    z = jnp.zeros((B, H), jnp.float32)
    _, _, h2_last, _ = lax.fori_loop(0, T, step, (z, z, z, z), unroll=True)

    # Fused MLP head (fc1 -> Dropout -> fc2 -> Dropout -> fc3 == one linear in
    # eval), lane-dense (padded to 128 output lanes) so the store is unmasked.
    o = jnp.dot(h2_last, whead_ref[...], preferred_element_type=jnp.float32) + bhead_ref[...]
    out_ref[...] = jax.nn.sigmoid(o)


def init_params(key, feature_num, hidden_size, seq_len):
    """Deterministic PyTorch-style uniform(-1/sqrt(K), 1/sqrt(K)) init."""
    H = hidden_size
    ks = jax.random.split(key, 14)
    k = 1.0 / jnp.sqrt(jnp.float32(H))

    def u(kk, shape, bound):
        return jax.random.uniform(kk, shape, jnp.float32, -bound, bound)

    params = dict(
        w_ih1=u(ks[0], (4 * H, feature_num), k),
        w_hh1=u(ks[1], (4 * H, H), k),
        b_ih1=u(ks[2], (4 * H,), k),
        b_hh1=u(ks[3], (4 * H,), k),
        w_ih2=u(ks[4], (4 * H, H), k),
        w_hh2=u(ks[5], (4 * H, H), k),
        b_ih2=u(ks[6], (4 * H,), k),
        b_hh2=u(ks[7], (4 * H,), k),
        w_fc1=u(ks[8], (32, H), 1.0 / jnp.sqrt(jnp.float32(H))),
        b_fc1=u(ks[9], (32,), 1.0 / jnp.sqrt(jnp.float32(H))),
        w_fc2=u(ks[10], (64, 32), 1.0 / jnp.sqrt(jnp.float32(32))),
        b_fc2=u(ks[11], (64,), 1.0 / jnp.sqrt(jnp.float32(32))),
        w_fc3=u(ks[12], (seq_len, 64), 1.0 / jnp.sqrt(jnp.float32(64))),
        b_fc3=u(ks[13], (seq_len,), 1.0 / jnp.sqrt(jnp.float32(64))),
    )
    return params


def lstm_cloud_forward(x, params, hidden_size, seq_len):
    """x: (B, T, F) float32 — same convention as the PyTorch module (batch_first)."""
    x = x.astype(jnp.float32)
    assert x.ndim == 3
    B, T, F = x.shape
    H = hidden_size

    # Pad batch (sublane) dim: tiles of up to 256 rows per grid block (MXU rows
    # are free up to 128/256 wide), grid over blocks for v7x megacore.
    B8 = ((B + 7) // 8) * 8
    TB = min(B8, 256)
    Bp = ((B8 + TB - 1) // TB) * TB
    n_blocks = Bp // TB

    x_p = jnp.pad(x, ((0, Bp - B), (0, 0), (0, 0)))
    x_tm = jnp.transpose(x_p, (1, 0, 2))  # (T, Bp, F) time-major

    # Hoist the layer-1 input projection (+ bias) out of the recurrence:
    # one well-shaped (T*Bp, F) @ (F, 4H) matmul done by XLA outside the kernel.
    b1 = params["b_ih1"] + params["b_hh1"]
    xw1 = jnp.einsum("tbf,fg->tbg", x_tm, params["w_ih1"].T) + b1[None, None, :]

    # Layer-2 weights (pre-transposed, kept separate so the h2 term can be
    # computed off the serial path inside the kernel).
    wih2 = params["w_ih2"].T                                              # (H, 4H)
    whh2 = params["w_hh2"].T                                              # (H, 4H)
    b2 = (params["b_ih2"] + params["b_hh2"]).reshape(1, -1)               # (1, 4H)

    # Fuse the activation-free MLP head into a single (H, seq_len) linear and
    # zero-pad it to a lane-dense 128-wide output.
    w1t = params["w_fc1"].T   # (H, 32)
    w2t = params["w_fc2"].T   # (32, 64)
    w3t = params["w_fc3"].T   # (64, seq_len)
    w_head = w1t @ w2t @ w3t                                              # (H, seq_len)
    b_head = ((params["b_fc1"] @ w2t + params["b_fc2"]) @ w3t
              + params["b_fc3"]).reshape(1, -1)                           # (1, seq_len)
    HEAD_N = ((seq_len + 127) // 128) * 128
    w_head_p = jnp.zeros((H, HEAD_N), jnp.float32).at[:, :seq_len].set(w_head)
    b_head_p = jnp.zeros((1, HEAD_N), jnp.float32).at[:, :seq_len].set(b_head)

    args = (xw1, params["w_hh1"].T, wih2, whh2, b2, w_head_p, b_head_p)

    # Weights/bias blocks are grid-invariant (index_map returns block 0).
    in_specs = [
        pl.BlockSpec((T, TB, 4 * H), lambda b: (0, b, 0)),
        pl.BlockSpec((H, 4 * H), lambda b: (0, 0)),
        pl.BlockSpec((H, 4 * H), lambda b: (0, 0)),
        pl.BlockSpec((H, 4 * H), lambda b: (0, 0)),
        pl.BlockSpec((1, 4 * H), lambda b: (0, 0)),
        pl.BlockSpec((H, HEAD_N), lambda b: (0, 0)),
        pl.BlockSpec((1, HEAD_N), lambda b: (0, 0)),
    ]
    out_spec = pl.BlockSpec((TB, HEAD_N), lambda b: (b, 0))

    out = pl.pallas_call(
        functools.partial(lstm_cloud_kernel, hidden_size=H),
        out_shape=jax.ShapeDtypeStruct((Bp, HEAD_N), jnp.float32),
        grid=(n_blocks,),
        in_specs=in_specs,
        out_specs=out_spec,
        compiler_params=pltpu.CompilerParams(
            dimension_semantics=("parallel",)),
    )(*args)
    return out[:B, :seq_len]

    # TODO(synk): if T grows large, stream xw1 over a T grid axis ("arbitrary",
    # BlockSpec (1, TB, 4H)) with h/c carried in VMEM scratch instead of keeping
    # the whole time-major slab VMEM-resident (matters first on v7x's 64 MiB).


def lstm_cloud_reference(x, params, hidden_size, seq_len):
    """Pure-JAX reference mirroring the PyTorch forward (eval mode)."""
    x = x.astype(jnp.float32)
    B, T, F = x.shape
    H = hidden_size

    def cell(x_in, h, c, w_ih, w_hh, b_ih, b_hh):
        g = x_in @ w_ih.T + h @ w_hh.T + b_ih + b_hh
        i = jax.nn.sigmoid(g[:, 0 * H:1 * H])
        f = jax.nn.sigmoid(g[:, 1 * H:2 * H])
        gg = jnp.tanh(g[:, 2 * H:3 * H])
        o = jax.nn.sigmoid(g[:, 3 * H:4 * H])
        c_new = f * c + i * gg
        return o * jnp.tanh(c_new), c_new

    h1 = c1 = h2 = c2 = jnp.zeros((B, H), jnp.float32)
    for t in range(T):
        h1, c1 = cell(x[:, t, :], h1, c1,
                      params["w_ih1"], params["w_hh1"], params["b_ih1"], params["b_hh1"])
        h2, c2 = cell(h1, h2, c2,
                      params["w_ih2"], params["w_hh2"], params["b_ih2"], params["b_hh2"])
    o = h2 @ params["w_fc1"].T + params["b_fc1"]
    o = o @ params["w_fc2"].T + params["b_fc2"]
    o = o @ params["w_fc3"].T + params["b_fc3"]
    return jax.nn.sigmoid(o)


if __name__ == "__main__":
    feature_num = 4
    hidden_size = 32
    seq_len = 8
    batch = 2

    key = jax.random.PRNGKey(0)
    kx, kp = jax.random.split(key)
    x = jax.random.normal(kx, (batch, seq_len, feature_num), jnp.float32)
    params = init_params(kp, feature_num, hidden_size, seq_len)

    out = lstm_cloud_forward(x, params, hidden_size, seq_len)
    out = jax.block_until_ready(out)

    ref = lstm_cloud_reference(x, params, hidden_size, seq_len)
    assert out.shape == (batch, seq_len)
    assert jnp.allclose(out, ref, atol=1e-5, rtol=1e-5), "mismatch vs reference"

    print("KERNEL_OK")
</pallas_src>

<mosaic_0001>
module attributes {stable_mosaic.version = 11 : i64} {
  func.func @lstm_cloud_kernel(%arg0: i32, %arg1: memref<8x8x128xf32, #tpu.memory_space<vmem>>, %arg2: memref<32x128xf32, #tpu.memory_space<vmem>>, %arg3: memref<32x128xf32, #tpu.memory_space<vmem>>, %arg4: memref<32x128xf32, #tpu.memory_space<vmem>>, %arg5: memref<1x128xf32, #tpu.memory_space<vmem>>, %arg6: memref<32x128xf32, #tpu.memory_space<vmem>>, %arg7: memref<1x128xf32, #tpu.memory_space<vmem>>, %arg8: memref<8x128xf32, #tpu.memory_space<vmem>>) attributes {dimension_semantics = [#tpu.dimension_semantics<parallel>], iteration_bounds = array<i64: 1>, scalar_prefetch = 0 : i64, scratch_operands = 0 : i64, tpu.core_type = #tpu.core_type<tc>, window_params = [{transform_indices = @transform_0, window_bounds = array<i64: 8, 8, 128>}, {pipeline_mode = #tpu.pipeline_mode<synchronous>, transform_indices = @transform_1, window_bounds = array<i64: 32, 128>}, {pipeline_mode = #tpu.pipeline_mode<synchronous>, transform_indices = @transform_2, window_bounds = array<i64: 32, 128>}, {pipeline_mode = #tpu.pipeline_mode<synchronous>, transform_indices = @transform_3, window_bounds = array<i64: 32, 128>}, {pipeline_mode = #tpu.pipeline_mode<synchronous>, transform_indices = @transform_4, window_bounds = array<i64: 1, 128>}, {pipeline_mode = #tpu.pipeline_mode<synchronous>, transform_indices = @transform_5, window_bounds = array<i64: 32, 128>}, {pipeline_mode = #tpu.pipeline_mode<synchronous>, transform_indices = @transform_6, window_bounds = array<i64: 1, 128>}, {transform_indices = @transform_7, window_bounds = array<i64: 8, 128>}]} {
    %c0 = arith.constant 0 : index
    %c0_0 = arith.constant 0 : index
    %0 = vector.load %arg2[%c0, %c0_0] : memref<32x128xf32, #tpu.memory_space<vmem>>, vector<32x128xf32>
    %c0_1 = arith.constant 0 : index
    %c0_2 = arith.constant 0 : index
    %1 = vector.load %arg3[%c0_1, %c0_2] : memref<32x128xf32, #tpu.memory_space<vmem>>, vector<32x128xf32>
    %c0_3 = arith.constant 0 : index
    %c0_4 = arith.constant 0 : index
    %2 = vector.load %arg4[%c0_3, %c0_4] : memref<32x128xf32, #tpu.memory_space<vmem>>, vector<32x128xf32>
    %c0_5 = arith.constant 0 : index
    %c0_6 = arith.constant 0 : index
    %3 = vector.load %arg5[%c0_5, %c0_6] : memref<1x128xf32, #tpu.memory_space<vmem>>, vector<1x128xf32>
    %4 = vector.shape_cast %3 : vector<1x128xf32> to vector<1x128xf32>
    %5 = vector.broadcast %4 : vector<1x128xf32> to vector<8x128xf32>
    %6 = tpu.iota {dimensions = array<i32: 1>} : vector<8x128xi32>
    %c64_i32 = arith.constant 64 : i32
    %7 = vector.broadcast %c64_i32 : i32 to vector<8x128xi32>
    %8 = arith.cmpi sge, %6, %7 : vector<8x128xi32>
    %c96_i32 = arith.constant 96 : i32
    %9 = vector.broadcast %c96_i32 : i32 to vector<8x128xi32>
    %10 = arith.cmpi slt, %6, %9 : vector<8x128xi32>
    %11 = arith.andi %8, %10 : vector<8x128xi1>
    %cst = arith.constant 0.000000e+00 : f32
    %12 = vector.broadcast %cst : f32 to vector<8x32xf32>
    %c0_i32 = arith.constant 0 : i32
    %cst_7 = arith.constant dense<0.000000e+00> : vector<8x128xf32>
    %13 = tpu.matmul %12, %2, %cst_7 {dimension_numbers = #tpu.dot_dimension_numbers<[1], [0], [0], [1], [0, 0, 1, 1], [], []>} : vector<8x32xf32>, vector<32x128xf32>, vector<8x128xf32> -> vector<8x128xf32>
    %14 = arith.addf %13, %5 : vector<8x128xf32>
    %cst_8 = arith.constant dense<0.000000e+00> : vector<8x128xf32>
    %15 = tpu.matmul %12, %0, %cst_8 {dimension_numbers = #tpu.dot_dimension_numbers<[1], [0], [0], [1], [0, 0, 1, 1], [], []>} : vector<8x32xf32>, vector<32x128xf32>, vector<8x128xf32> -> vector<8x128xf32>
    %16 = arith.index_cast %c0_i32 : i32 to index
    %c0_9 = arith.constant 0 : index
    %c0_10 = arith.constant 0 : index
    %17 = vector.load %arg1[%16, %c0_9, %c0_10] : memref<8x8x128xf32, #tpu.memory_space<vmem>>, vector<1x8x128xf32>
    %18 = vector.shape_cast %17 : vector<1x8x128xf32> to vector<8x128xf32>
    %19 = arith.addf %15, %18 : vector<8x128xf32>
    %20 = arith.negf %19 : vector<8x128xf32>
    %21 = math.exp %20 : vector<8x128xf32>
    %cst_11 = arith.constant 1.000000e+00 : f32
    %22 = vector.broadcast %cst_11 : f32 to vector<8x128xf32>
    %23 = arith.addf %22, %21 : vector<8x128xf32>
    %24 = arith.divf %22, %23 : vector<8x128xf32>
    %25 = math.tanh %19 : vector<8x128xf32>
    %26 = arith.select %11, %25, %24 : vector<8x128xi1>, vector<8x128xf32>
    %27 = vector.extract_strided_slice %26 {offsets = [0, 0], sizes = [8, 32], strides = [1, 1]} : vector<8x128xf32> to vector<8x32xf32>
    %28 = vector.extract_strided_slice %26 {offsets = [0, 32], sizes = [8, 32], strides = [1, 1]} : vector<8x128xf32> to vector<8x32xf32>
    %29 = vector.extract_strided_slice %26 {offsets = [0, 64], sizes = [8, 32], strides = [1, 1]} : vector<8x128xf32> to vector<8x32xf32>
    %30 = vector.extract_strided_slice %26 {offsets = [0, 96], sizes = [8, 32], strides = [1, 1]} : vector<8x128xf32> to vector<8x32xf32>
    %31 = arith.mulf %28, %12 : vector<8x32xf32>
    %32 = arith.mulf %27, %29 : vector<8x32xf32>
    %33 = arith.addf %31, %32 : vector<8x32xf32>
    %34 = math.tanh %33 : vector<8x32xf32>
    %35 = arith.mulf %30, %34 : vector<8x32xf32>
    %cst_12 = arith.constant dense<0.000000e+00> : vector<8x128xf32>
    %36 = tpu.matmul %35, %1, %cst_12 {dimension_numbers = #tpu.dot_dimension_numbers<[1], [0], [0], [1], [0, 0, 1, 1], [], []>} : vector<8x32xf32>, vector<32x128xf32>, vector<8x128xf32> -> vector<8x128xf32>
    %37 = arith.addf %36, %14 : vector<8x128xf32>
    %38 = arith.negf %37 : vector<8x128xf32>
    %39 = math.exp %38 : vector<8x128xf32>
    %cst_13 = arith.constant 1.000000e+00 : f32
    %40 = vector.broadcast %cst_13 : f32 to vector<8x128xf32>
    %41 = arith.addf %40, %39 : vector<8x128xf32>
    %42 = arith.divf %40, %41 : vector<8x128xf32>
    %43 = math.tanh %37 : vector<8x128xf32>
    %44 = arith.select %11, %43, %42 : vector<8x128xi1>, vector<8x128xf32>
    %45 = vector.extract_strided_slice %44 {offsets = [0, 0], sizes = [8, 32], strides = [1, 1]} : vector<8x128xf32> to vector<8x32xf32>
    %46 = vector.extract_strided_slice %44 {offsets = [0, 32], sizes = [8, 32], strides = [1, 1]} : vector<8x128xf32> to vector<8x32xf32>
    %47 = vector.extract_strided_slice %44 {offsets = [0, 64], sizes = [8, 32], strides = [1, 1]} : vector<8x128xf32> to vector<8x32xf32>
    %48 = vector.extract_strided_slice %44 {offsets = [0, 96], sizes = [8, 32], strides = [1, 1]} : vector<8x128xf32> to vector<8x32xf32>
    %49 = arith.mulf %46, %12 : vector<8x32xf32>
    %50 = arith.mulf %45, %47 : vector<8x32xf32>
    %51 = arith.addf %49, %50 : vector<8x32xf32>
    %52 = math.tanh %51 : vector<8x32xf32>
    %53 = arith.mulf %48, %52 : vector<8x32xf32>
    %c1_i32 = arith.constant 1 : i32
    %cst_14 = arith.constant dense<0.000000e+00> : vector<8x128xf32>
    %54 = tpu.matmul %53, %2, %cst_14 {dimension_numbers = #tpu.dot_dimension_numbers<[1], [0], [0], [1], [0, 0, 1, 1], [], []>} : vector<8x32xf32>, vector<32x128xf32>, vector<8x128xf32> -> vector<8x128xf32>
    %55 = arith.addf %54, %5 : vector<8x128xf32>
    %cst_15 = arith.constant dense<0.000000e+00> : vector<8x128xf32>
    %56 = tpu.matmul %35, %0, %cst_15 {dimension_numbers = #tpu.dot_dimension_numbers<[1], [0], [0], [1], [0, 0, 1, 1], [], []>} : vector<8x32xf32>, vector<32x128xf32>, vector<8x128xf32> -> vector<8x128xf32>
    %57 = arith.index_cast %c1_i32 : i32 to index
    %c0_16 = arith.constant 0 : index
    %c0_17 = arith.constant 0 : index
    %58 = vector.load %arg1[%57, %c0_16, %c0_17] : memref<8x8x128xf32, #tpu.memory_space<vmem>>, vector<1x8x128xf32>
    %59 = vector.shape_cast %58 : vector<1x8x128xf32> to vector<8x128xf32>
    %60 = arith.addf %56, %59 : vector<8x128xf32>
    %61 = arith.negf %60 : vector<8x128xf32>
    %62 = math.exp %61 : vector<8x128xf32>
    %cst_18 = arith.constant 1.000000e+00 : f32
    %63 = vector.broadcast %cst_18 : f32 to vector<8x128xf32>
    %64 = arith.addf %63, %62 : vector<8x128xf32>
    %65 = arith.divf %63, %64 : vector<8x128xf32>
    %66 = math.tanh %60 : vector<8x128xf32>
    %67 = arith.select %11, %66, %65 : vector<8x128xi1>, vector<8x128xf32>
    %68 = vector.extract_strided_slice %67 {offsets = [0, 0], sizes = [8, 32], strides = [1, 1]} : vector<8x128xf32> to vector<8x32xf32>
    %69 = vector.extract_strided_slice %67 {offsets = [0, 32], sizes = [8, 32], strides = [1, 1]} : vector<8x128xf32> to vector<8x32xf32>
    %70 = vector.extract_strided_slice %67 {offsets = [0, 64], sizes = [8, 32], strides = [1, 1]} : vector<8x128xf32> to vector<8x32xf32>
    %71 = vector.extract_strided_slice %67 {offsets = [0, 96], sizes = [8, 32], strides = [1, 1]} : vector<8x128xf32> to vector<8x32xf32>
    %72 = arith.mulf %69, %33 : vector<8x32xf32>
    %73 = arith.mulf %68, %70 : vector<8x32xf32>
    %74 = arith.addf %72, %73 : vector<8x32xf32>
    %75 = math.tanh %74 : vector<8x32xf32>
    %76 = arith.mulf %71, %75 : vector<8x32xf32>
    %cst_19 = arith.constant dense<0.000000e+00> : vector<8x128xf32>
    %77 = tpu.matmul %76, %1, %cst_19 {dimension_numbers = #tpu.dot_dimension_numbers<[1], [0], [0], [1], [0, 0, 1, 1], [], []>} : vector<8x32xf32>, vector<32x128xf32>, vector<8x128xf32> -> vector<8x128xf32>
    %78 = arith.addf %77, %55 : vector<8x128xf32>
    %79 = arith.negf %78 : vector<8x128xf32>
    %80 = math.exp %79 : vector<8x128xf32>
    %cst_20 = arith.constant 1.000000e+00 : f32
    %81 = vector.broadcast %cst_20 : f32 to vector<8x128xf32>
    %82 = arith.addf %81, %80 : vector<8x128xf32>
    %83 = arith.divf %81, %82 : vector<8x128xf32>
    %84 = math.tanh %78 : vector<8x128xf32>
    %85 = arith.select %11, %84, %83 : vector<8x128xi1>, vector<8x128xf32>
    %86 = vector.extract_strided_slice %85 {offsets = [0, 0], sizes = [8, 32], strides = [1, 1]} : vector<8x128xf32> to vector<8x32xf32>
    %87 = vector.extract_strided_slice %85 {offsets = [0, 32], sizes = [8, 32], strides = [1, 1]} : vector<8x128xf32> to vector<8x32xf32>
    %88 = vector.extract_strided_slice %85 {offsets = [0, 64], sizes = [8, 32], strides = [1, 1]} : vector<8x128xf32> to vector<8x32xf32>
    %89 = vector.extract_strided_slice %85 {offsets = [0, 96], sizes = [8, 32], strides = [1, 1]} : vector<8x128xf32> to vector<8x32xf32>
    %90 = arith.mulf %87, %51 : vector<8x32xf32>
    %91 = arith.mulf %86, %88 : vector<8x32xf32>
    %92 = arith.addf %90, %91 : vector<8x32xf32>
    %93 = math.tanh %92 : vector<8x32xf32>
    %94 = arith.mulf %89, %93 : vector<8x32xf32>
    %c2_i32 = arith.constant 2 : i32
    %cst_21 = arith.constant dense<0.000000e+00> : vector<8x128xf32>
    %95 = tpu.matmul %94, %2, %cst_21 {dimension_numbers = #tpu.dot_dimension_numbers<[1], [0], [0], [1], [0, 0, 1, 1], [], []>} : vector<8x32xf32>, vector<32x128xf32>, vector<8x128xf32> -> vector<8x128xf32>
    %96 = arith.addf %95, %5 : vector<8x128xf32>
    %cst_22 = arith.constant dense<0.000000e+00> : vector<8x128xf32>
    %97 = tpu.matmul %76, %0, %cst_22 {dimension_numbers = #tpu.dot_dimension_numbers<[1], [0], [0], [1], [0, 0, 1, 1], [], []>} : vector<8x32xf32>, vector<32x128xf32>, vector<8x128xf32> -> vector<8x128xf32>
    %98 = arith.index_cast %c2_i32 : i32 to index
    %c0_23 = arith.constant 0 : index
    %c0_24 = arith.constant 0 : index
    %99 = vector.load %arg1[%98, %c0_23, %c0_24] : memref<8x8x128xf32, #tpu.memory_space<vmem>>, vector<1x8x128xf32>
    %100 = vector.shape_cast %99 : vector<1x8x128xf32> to vector<8x128xf32>
    %101 = arith.addf %97, %100 : vector<8x128xf32>
    %102 = arith.negf %101 : vector<8x128xf32>
    %103 = math.exp %102 : vector<8x128xf32>
    %cst_25 = arith.constant 1.000000e+00 : f32
    %104 = vector.broadcast %cst_25 : f32 to vector<8x128xf32>
    %105 = arith.addf %104, %103 : vector<8x128xf32>
    %106 = arith.divf %104, %105 : vector<8x128xf32>
    %107 = math.tanh %101 : vector<8x128xf32>
    %108 = arith.select %11, %107, %106 : vector<8x128xi1>, vector<8x128xf32>
    %109 = vector.extract_strided_slice %108 {offsets = [0, 0], sizes = [8, 32], strides = [1, 1]} : vector<8x128xf32> to vector<8x32xf32>
    %110 = vector.extract_strided_slice %108 {offsets = [0, 32], sizes = [8, 32], strides = [1, 1]} : vector<8x128xf32> to vector<8x32xf32>
    %111 = vector.extract_strided_slice %108 {offsets = [0, 64], sizes = [8, 32], strides = [1, 1]} : vector<8x128xf32> to vector<8x32xf32>
    %112 = vector.extract_strided_slice %108 {offsets = [0, 96], sizes = [8, 32], strides = [1, 1]} : vector<8x128xf32> to vector<8x32xf32>
    %113 = arith.mulf %110, %74 : vector<8x32xf32>
    %114 = arith.mulf %109, %111 : vector<8x32xf32>
    %115 = arith.addf %113, %114 : vector<8x32xf32>
    %116 = math.tanh %115 : vector<8x32xf32>
    %117 = arith.mulf %112, %116 : vector<8x32xf32>
    %cst_26 = arith.constant dense<0.000000e+00> : vector<8x128xf32>
    %118 = tpu.matmul %117, %1, %cst_26 {dimension_numbers = #tpu.dot_dimension_numbers<[1], [0], [0], [1], [0, 0, 1, 1], [], []>} : vector<8x32xf32>, vector<32x128xf32>, vector<8x128xf32> -> vector<8x128xf32>
    %119 = arith.addf %118, %96 : vector<8x128xf32>
    %120 = arith.negf %119 : vector<8x128xf32>
    %121 = math.exp %120 : vector<8x128xf32>
    %cst_27 = arith.constant 1.000000e+00 : f32
    %122 = vector.broadcast %cst_27 : f32 to vector<8x128xf32>
    %123 = arith.addf %122, %121 : vector<8x128xf32>
    %124 = arith.divf %122, %123 : vector<8x128xf32>
    %125 = math.tanh %119 : vector<8x128xf32>
    %126 = arith.select %11, %125, %124 : vector<8x128xi1>, vector<8x128xf32>
    %127 = vector.extract_strided_slice %126 {offsets = [0, 0], sizes = [8, 32], strides = [1, 1]} : vector<8x128xf32> to vector<8x32xf32>
    %128 = vector.extract_strided_slice %126 {offsets = [0, 32], sizes = [8, 32], strides = [1, 1]} : vector<8x128xf32> to vector<8x32xf32>
    %129 = vector.extract_strided_slice %126 {offsets = [0, 64], sizes = [8, 32], strides = [1, 1]} : vector<8x128xf32> to vector<8x32xf32>
    %130 = vector.extract_strided_slice %126 {offsets = [0, 96], sizes = [8, 32], strides = [1, 1]} : vector<8x128xf32> to vector<8x32xf32>
    %131 = arith.mulf %128, %92 : vector<8x32xf32>
    %132 = arith.mulf %127, %129 : vector<8x32xf32>
    %133 = arith.addf %131, %132 : vector<8x32xf32>
    %134 = math.tanh %133 : vector<8x32xf32>
    %135 = arith.mulf %130, %134 : vector<8x32xf32>
    %c3_i32 = arith.constant 3 : i32
    %cst_28 = arith.constant dense<0.000000e+00> : vector<8x128xf32>
    %136 = tpu.matmul %135, %2, %cst_28 {dimension_numbers = #tpu.dot_dimension_numbers<[1], [0], [0], [1], [0, 0, 1, 1], [], []>} : vector<8x32xf32>, vector<32x128xf32>, vector<8x128xf32> -> vector<8x128xf32>
    %137 = arith.addf %136, %5 : vector<8x128xf32>
    %cst_29 = arith.constant dense<0.000000e+00> : vector<8x128xf32>
    %138 = tpu.matmul %117, %0, %cst_29 {dimension_numbers = #tpu.dot_dimension_numbers<[1], [0], [0], [1], [0, 0, 1, 1], [], []>} : vector<8x32xf32>, vector<32x128xf32>, vector<8x128xf32> -> vector<8x128xf32>
    %139 = arith.index_cast %c3_i32 : i32 to index
    %c0_30 = arith.constant 0 : index
    %c0_31 = arith.constant 0 : index
    %140 = vector.load %arg1[%139, %c0_30, %c0_31] : memref<8x8x128xf32, #tpu.memory_space<vmem>>, vector<1x8x128xf32>
    %141 = vector.shape_cast %140 : vector<1x8x128xf32> to vector<8x128xf32>
    %142 = arith.addf %138, %141 : vector<8x128xf32>
    %143 = arith.negf %142 : vector<8x128xf32>
    %144 = math.exp %143 : vector<8x128xf32>
    %cst_32 = arith.constant 1.000000e+00 : f32
    %145 = vector.broadcast %cst_32 : f32 to vector<8x128xf32>
    %146 = arith.addf %145, %144 : vector<8x128xf32>
    %147 = arith.divf %145, %146 : vector<8x128xf32>
    %148 = math.tanh %142 : vector<8x128xf32>
    %149 = arith.select %11, %148, %147 : vector<8x128xi1>, vector<8x128xf32>
    %150 = vector.extract_strided_slice %149 {offsets = [0, 0], sizes = [8, 32], strides = [1, 1]} : vector<8x128xf32> to vector<8x32xf32>
    %151 = vector.extract_strided_slice %149 {offsets = [0, 32], sizes = [8, 32], strides = [1, 1]} : vector<8x128xf32> to vector<8x32xf32>
    %152 = vector.extract_strided_slice %149 {offsets = [0, 64], sizes = [8, 32], strides = [1, 1]} : vector<8x128xf32> to vector<8x32xf32>
    %153 = vector.extract_strided_slice %149 {offsets = [0, 96], sizes = [8, 32], strides = [1, 1]} : vector<8x128xf32> to vector<8x32xf32>
    %154 = arith.mulf %151, %115 : vector<8x32xf32>
    %155 = arith.mulf %150, %152 : vector<8x32xf32>
    %156 = arith.addf %154, %155 : vector<8x32xf32>
    %157 = math.tanh %156 : vector<8x32xf32>
    %158 = arith.mulf %153, %157 : vector<8x32xf32>
    %cst_33 = arith.constant dense<0.000000e+00> : vector<8x128xf32>
    %159 = tpu.matmul %158, %1, %cst_33 {dimension_numbers = #tpu.dot_dimension_numbers<[1], [0], [0], [1], [0, 0, 1, 1], [], []>} : vector<8x32xf32>, vector<32x128xf32>, vector<8x128xf32> -> vector<8x128xf32>
    %160 = arith.addf %159, %137 : vector<8x128xf32>
    %161 = arith.negf %160 : vector<8x128xf32>
    %162 = math.exp %161 : vector<8x128xf32>
    %cst_34 = arith.constant 1.000000e+00 : f32
    %163 = vector.broadcast %cst_34 : f32 to vector<8x128xf32>
    %164 = arith.addf %163, %162 : vector<8x128xf32>
    %165 = arith.divf %163, %164 : vector<8x128xf32>
    %166 = math.tanh %160 : vector<8x128xf32>
    %167 = arith.select %11, %166, %165 : vector<8x128xi1>, vector<8x128xf32>
    %168 = vector.extract_strided_slice %167 {offsets = [0, 0], sizes = [8, 32], strides = [1, 1]} : vector<8x128xf32> to vector<8x32xf32>
    %169 = vector.extract_strided_slice %167 {offsets = [0, 32], sizes = [8, 32], strides = [1, 1]} : vector<8x128xf32> to vector<8x32xf32>
    %170 = vector.extract_strided_slice %167 {offsets = [0, 64], sizes = [8, 32], strides = [1, 1]} : vector<8x128xf32> to vector<8x32xf32>
    %171 = vector.extract_strided_slice %167 {offsets = [0, 96], sizes = [8, 32], strides = [1, 1]} : vector<8x128xf32> to vector<8x32xf32>
    %172 = arith.mulf %169, %133 : vector<8x32xf32>
    %173 = arith.mulf %168, %170 : vector<8x32xf32>
    %174 = arith.addf %172, %173 : vector<8x32xf32>
    %175 = math.tanh %174 : vector<8x32xf32>
    %176 = arith.mulf %171, %175 : vector<8x32xf32>
    %c4_i32 = arith.constant 4 : i32
    %cst_35 = arith.constant dense<0.000000e+00> : vector<8x128xf32>
    %177 = tpu.matmul %176, %2, %cst_35 {dimension_numbers = #tpu.dot_dimension_numbers<[1], [0], [0], [1], [0, 0, 1, 1], [], []>} : vector<8x32xf32>, vector<32x128xf32>, vector<8x128xf32> -> vector<8x128xf32>
    %178 = arith.addf %177, %5 : vector<8x128xf32>
    %cst_36 = arith.constant dense<0.000000e+00> : vector<8x128xf32>
    %179 = tpu.matmul %158, %0, %cst_36 {dimension_numbers = #tpu.dot_dimension_numbers<[1], [0], [0], [1], [0, 0, 1, 1], [], []>} : vector<8x32xf32>, vector<32x128xf32>, vector<8x128xf32> -> vector<8x128xf32>
    %180 = arith.index_cast %c4_i32 : i32 to index
    %c0_37 = arith.constant 0 : index
    %c0_38 = arith.constant 0 : index
    %181 = vector.load %arg1[%180, %c0_37, %c0_38] : memref<8x8x128xf32, #tpu.memory_space<vmem>>, vector<1x8x128xf32>
    %182 = vector.shape_cast %181 : vector<1x8x128xf32> to vector<8x128xf32>
    %183 = arith.addf %179, %182 : vector<8x128xf32>
    %184 = arith.negf %183 : vector<8x128xf32>
    %185 = math.exp %184 : vector<8x128xf32>
    %cst_39 = arith.constant 1.000000e+00 : f32
    %186 = vector.broadcast %cst_39 : f32 to vector<8x128xf32>
    %187 = arith.addf %186, %185 : vector<8x128xf32>
    %188 = arith.divf %186, %187 : vector<8x128xf32>
    %189 = math.tanh %183 : vector<8x128xf32>
    %190 = arith.select %11, %189, %188 : vector<8x128xi1>, vector<8x128xf32>
    %191 = vector.extract_strided_slice %190 {offsets = [0, 0], sizes = [8, 32], strides = [1, 1]} : vector<8x128xf32> to vector<8x32xf32>
    %192 = vector.extract_strided_slice %190 {offsets = [0, 32], sizes = [8, 32], strides = [1, 1]} : vector<8x128xf32> to vector<8x32xf32>
    %193 = vector.extract_strided_slice %190 {offsets = [0, 64], sizes = [8, 32], strides = [1, 1]} : vector<8x128xf32> to vector<8x32xf32>
    %194 = vector.extract_strided_slice %190 {offsets = [0, 96], sizes = [8, 32], strides = [1, 1]} : vector<8x128xf32> to vector<8x32xf32>
    %195 = arith.mulf %192, %156 : vector<8x32xf32>
    %196 = arith.mulf %191, %193 : vector<8x32xf32>
    %197 = arith.addf %195, %196 : vector<8x32xf32>
    %198 = math.tanh %197 : vector<8x32xf32>
    %199 = arith.mulf %194, %198 : vector<8x32xf32>
    %cst_40 = arith.constant dense<0.000000e+00> : vector<8x128xf32>
    %200 = tpu.matmul %199, %1, %cst_40 {dimension_numbers = #tpu.dot_dimension_numbers<[1], [0], [0], [1], [0, 0, 1, 1], [], []>} : vector<8x32xf32>, vector<32x128xf32>, vector<8x128xf32> -> vector<8x128xf32>
    %201 = arith.addf %200, %178 : vector<8x128xf32>
    %202 = arith.negf %201 : vector<8x128xf32>
    %203 = math.exp %202 : vector<8x128xf32>
    %cst_41 = arith.constant 1.000000e+00 : f32
    %204 = vector.broadcast %cst_41 : f32 to vector<8x128xf32>
    %205 = arith.addf %204, %203 : vector<8x128xf32>
    %206 = arith.divf %204, %205 : vector<8x128xf32>
    %207 = math.tanh %201 : vector<8x128xf32>
    %208 = arith.select %11, %207, %206 : vector<8x128xi1>, vector<8x128xf32>
    %209 = vector.extract_strided_slice %208 {offsets = [0, 0], sizes = [8, 32], strides = [1, 1]} : vector<8x128xf32> to vector<8x32xf32>
    %210 = vector.extract_strided_slice %208 {offsets = [0, 32], sizes = [8, 32], strides = [1, 1]} : vector<8x128xf32> to vector<8x32xf32>
    %211 = vector.extract_strided_slice %208 {offsets = [0, 64], sizes = [8, 32], strides = [1, 1]} : vector<8x128xf32> to vector<8x32xf32>
    %212 = vector.extract_strided_slice %208 {offsets = [0, 96], sizes = [8, 32], strides = [1, 1]} : vector<8x128xf32> to vector<8x32xf32>
    %213 = arith.mulf %210, %174 : vector<8x32xf32>
    %214 = arith.mulf %209, %211 : vector<8x32xf32>
    %215 = arith.addf %213, %214 : vector<8x32xf32>
    %216 = math.tanh %215 : vector<8x32xf32>
    %217 = arith.mulf %212, %216 : vector<8x32xf32>
    %c5_i32 = arith.constant 5 : i32
    %cst_42 = arith.constant dense<0.000000e+00> : vector<8x128xf32>
    %218 = tpu.matmul %217, %2, %cst_42 {dimension_numbers = #tpu.dot_dimension_numbers<[1], [0], [0], [1], [0, 0, 1, 1], [], []>} : vector<8x32xf32>, vector<32x128xf32>, vector<8x128xf32> -> vector<8x128xf32>
    %219 = arith.addf %218, %5 : vector<8x128xf32>
    %cst_43 = arith.constant dense<0.000000e+00> : vector<8x128xf32>
    %220 = tpu.matmul %199, %0, %cst_43 {dimension_numbers = #tpu.dot_dimension_numbers<[1], [0], [0], [1], [0, 0, 1, 1], [], []>} : vector<8x32xf32>, vector<32x128xf32>, vector<8x128xf32> -> vector<8x128xf32>
    %221 = arith.index_cast %c5_i32 : i32 to index
    %c0_44 = arith.constant 0 : index
    %c0_45 = arith.constant 0 : index
    %222 = vector.load %arg1[%221, %c0_44, %c0_45] : memref<8x8x128xf32, #tpu.memory_space<vmem>>, vector<1x8x128xf32>
    %223 = vector.shape_cast %222 : vector<1x8x128xf32> to vector<8x128xf32>
    %224 = arith.addf %220, %223 : vector<8x128xf32>
    %225 = arith.negf %224 : vector<8x128xf32>
    %226 = math.exp %225 : vector<8x128xf32>
    %cst_46 = arith.constant 1.000000e+00 : f32
    %227 = vector.broadcast %cst_46 : f32 to vector<8x128xf32>
    %228 = arith.addf %227, %226 : vector<8x128xf32>
    %229 = arith.divf %227, %228 : vector<8x128xf32>
    %230 = math.tanh %224 : vector<8x128xf32>
    %231 = arith.select %11, %230, %229 : vector<8x128xi1>, vector<8x128xf32>
    %232 = vector.extract_strided_slice %231 {offsets = [0, 0], sizes = [8, 32], strides = [1, 1]} : vector<8x128xf32> to vector<8x32xf32>
    %233 = vector.extract_strided_slice %231 {offsets = [0, 32], sizes = [8, 32], strides = [1, 1]} : vector<8x128xf32> to vector<8x32xf32>
    %234 = vector.extract_strided_slice %231 {offsets = [0, 64], sizes = [8, 32], strides = [1, 1]} : vector<8x128xf32> to vector<8x32xf32>
    %235 = vector.extract_strided_slice %231 {offsets = [0, 96], sizes = [8, 32], strides = [1, 1]} : vector<8x128xf32> to vector<8x32xf32>
    %236 = arith.mulf %233, %197 : vector<8x32xf32>
    %237 = arith.mulf %232, %234 : vector<8x32xf32>
    %238 = arith.addf %236, %237 : vector<8x32xf32>
    %239 = math.tanh %238 : vector<8x32xf32>
    %240 = arith.mulf %235, %239 : vector<8x32xf32>
    %cst_47 = arith.constant dense<0.000000e+00> : vector<8x128xf32>
    %241 = tpu.matmul %240, %1, %cst_47 {dimension_numbers = #tpu.dot_dimension_numbers<[1], [0], [0], [1], [0, 0, 1, 1], [], []>} : vector<8x32xf32>, vector<32x128xf32>, vector<8x128xf32> -> vector<8x128xf32>
    %242 = arith.addf %241, %219 : vector<8x128xf32>
    %243 = arith.negf %242 : vector<8x128xf32>
    %244 = math.exp %243 : vector<8x128xf32>
    %cst_48 = arith.constant 1.000000e+00 : f32
    %245 = vector.broadcast %cst_48 : f32 to vector<8x128xf32>
    %246 = arith.addf %245, %244 : vector<8x128xf32>
    %247 = arith.divf %245, %246 : vector<8x128xf32>
    %248 = math.tanh %242 : vector<8x128xf32>
    %249 = arith.select %11, %248, %247 : vector<8x128xi1>, vector<8x128xf32>
    %250 = vector.extract_strided_slice %249 {offsets = [0, 0], sizes = [8, 32], strides = [1, 1]} : vector<8x128xf32> to vector<8x32xf32>
    %251 = vector.extract_strided_slice %249 {offsets = [0, 32], sizes = [8, 32], strides = [1, 1]} : vector<8x128xf32> to vector<8x32xf32>
    %252 = vector.extract_strided_slice %249 {offsets = [0, 64], sizes = [8, 32], strides = [1, 1]} : vector<8x128xf32> to vector<8x32xf32>
    %253 = vector.extract_strided_slice %249 {offsets = [0, 96], sizes = [8, 32], strides = [1, 1]} : vector<8x128xf32> to vector<8x32xf32>
    %254 = arith.mulf %251, %215 : vector<8x32xf32>
    %255 = arith.mulf %250, %252 : vector<8x32xf32>
    %256 = arith.addf %254, %255 : vector<8x32xf32>
    %257 = math.tanh %256 : vector<8x32xf32>
    %258 = arith.mulf %253, %257 : vector<8x32xf32>
    %c6_i32 = arith.constant 6 : i32
    %cst_49 = arith.constant dense<0.000000e+00> : vector<8x128xf32>
    %259 = tpu.matmul %258, %2, %cst_49 {dimension_numbers = #tpu.dot_dimension_numbers<[1], [0], [0], [1], [0, 0, 1, 1], [], []>} : vector<8x32xf32>, vector<32x128xf32>, vector<8x128xf32> -> vector<8x128xf32>
    %260 = arith.addf %259, %5 : vector<8x128xf32>
    %cst_50 = arith.constant dense<0.000000e+00> : vector<8x128xf32>
    %261 = tpu.matmul %240, %0, %cst_50 {dimension_numbers = #tpu.dot_dimension_numbers<[1], [0], [0], [1], [0, 0, 1, 1], [], []>} : vector<8x32xf32>, vector<32x128xf32>, vector<8x128xf32> -> vector<8x128xf32>
    %262 = arith.index_cast %c6_i32 : i32 to index
    %c0_51 = arith.constant 0 : index
    %c0_52 = arith.constant 0 : index
    %263 = vector.load %arg1[%262, %c0_51, %c0_52] : memref<8x8x128xf32, #tpu.memory_space<vmem>>, vector<1x8x128xf32>
    %264 = vector.shape_cast %263 : vector<1x8x128xf32> to vector<8x128xf32>
    %265 = arith.addf %261, %264 : vector<8x128xf32>
    %266 = arith.negf %265 : vector<8x128xf32>
    %267 = math.exp %266 : vector<8x128xf32>
    %cst_53 = arith.constant 1.000000e+00 : f32
    %268 = vector.broadcast %cst_53 : f32 to vector<8x128xf32>
    %269 = arith.addf %268, %267 : vector<8x128xf32>
    %270 = arith.divf %268, %269 : vector<8x128xf32>
    %271 = math.tanh %265 : vector<8x128xf32>
    %272 = arith.select %11, %271, %270 : vector<8x128xi1>, vector<8x128xf32>
    %273 = vector.extract_strided_slice %272 {offsets = [0, 0], sizes = [8, 32], strides = [1, 1]} : vector<8x128xf32> to vector<8x32xf32>
    %274 = vector.extract_strided_slice %272 {offsets = [0, 32], sizes = [8, 32], strides = [1, 1]} : vector<8x128xf32> to vector<8x32xf32>
    %275 = vector.extract_strided_slice %272 {offsets = [0, 64], sizes = [8, 32], strides = [1, 1]} : vector<8x128xf32> to vector<8x32xf32>
    %276 = vector.extract_strided_slice %272 {offsets = [0, 96], sizes = [8, 32], strides = [1, 1]} : vector<8x128xf32> to vector<8x32xf32>
    %277 = arith.mulf %274, %238 : vector<8x32xf32>
    %278 = arith.mulf %273, %275 : vector<8x32xf32>
    %279 = arith.addf %277, %278 : vector<8x32xf32>
    %280 = math.tanh %279 : vector<8x32xf32>
    %281 = arith.mulf %276, %280 : vector<8x32xf32>
    %cst_54 = arith.constant dense<0.000000e+00> : vector<8x128xf32>
    %282 = tpu.matmul %281, %1, %cst_54 {dimension_numbers = #tpu.dot_dimension_numbers<[1], [0], [0], [1], [0, 0, 1, 1], [], []>} : vector<8x32xf32>, vector<32x128xf32>, vector<8x128xf32> -> vector<8x128xf32>
    %283 = arith.addf %282, %260 : vector<8x128xf32>
    %284 = arith.negf %283 : vector<8x128xf32>
    %285 = math.exp %284 : vector<8x128xf32>
    %cst_55 = arith.constant 1.000000e+00 : f32
    %286 = vector.broadcast %cst_55 : f32 to vector<8x128xf32>
    %287 = arith.addf %286, %285 : vector<8x128xf32>
    %288 = arith.divf %286, %287 : vector<8x128xf32>
    %289 = math.tanh %283 : vector<8x128xf32>
    %290 = arith.select %11, %289, %288 : vector<8x128xi1>, vector<8x128xf32>
    %291 = vector.extract_strided_slice %290 {offsets = [0, 0], sizes = [8, 32], strides = [1, 1]} : vector<8x128xf32> to vector<8x32xf32>
    %292 = vector.extract_strided_slice %290 {offsets = [0, 32], sizes = [8, 32], strides = [1, 1]} : vector<8x128xf32> to vector<8x32xf32>
    %293 = vector.extract_strided_slice %290 {offsets = [0, 64], sizes = [8, 32], strides = [1, 1]} : vector<8x128xf32> to vector<8x32xf32>
    %294 = vector.extract_strided_slice %290 {offsets = [0, 96], sizes = [8, 32], strides = [1, 1]} : vector<8x128xf32> to vector<8x32xf32>
    %295 = arith.mulf %292, %256 : vector<8x32xf32>
    %296 = arith.mulf %291, %293 : vector<8x32xf32>
    %297 = arith.addf %295, %296 : vector<8x32xf32>
    %298 = math.tanh %297 : vector<8x32xf32>
    %299 = arith.mulf %294, %298 : vector<8x32xf32>
    %c7_i32 = arith.constant 7 : i32
    %cst_56 = arith.constant dense<0.000000e+00> : vector<8x128xf32>
    %300 = tpu.matmul %299, %2, %cst_56 {dimension_numbers = #tpu.dot_dimension_numbers<[1], [0], [0], [1], [0, 0, 1, 1], [], []>} : vector<8x32xf32>, vector<32x128xf32>, vector<8x128xf32> -> vector<8x128xf32>
    %301 = arith.addf %300, %5 : vector<8x128xf32>
    %cst_57 = arith.constant dense<0.000000e+00> : vector<8x128xf32>
    %302 = tpu.matmul %281, %0, %cst_57 {dimension_numbers = #tpu.dot_dimension_numbers<[1], [0], [0], [1], [0, 0, 1, 1], [], []>} : vector<8x32xf32>, vector<32x128xf32>, vector<8x128xf32> -> vector<8x128xf32>
    %303 = arith.index_cast %c7_i32 : i32 to index
    %c0_58 = arith.constant 0 : index
    %c0_59 = arith.constant 0 : index
    %304 = vector.load %arg1[%303, %c0_58, %c0_59] : memref<8x8x128xf32, #tpu.memory_space<vmem>>, vector<1x8x128xf32>
    %305 = vector.shape_cast %304 : vector<1x8x128xf32> to vector<8x128xf32>
    %306 = arith.addf %302, %305 : vector<8x128xf32>
    %307 = arith.negf %306 : vector<8x128xf32>
    %308 = math.exp %307 : vector<8x128xf32>
    %cst_60 = arith.constant 1.000000e+00 : f32
    %309 = vector.broadcast %cst_60 : f32 to vector<8x128xf32>
    %310 = arith.addf %309, %308 : vector<8x128xf32>
    %311 = arith.divf %309, %310 : vector<8x128xf32>
    %312 = math.tanh %306 : vector<8x128xf32>
    %313 = arith.select %11, %312, %311 : vector<8x128xi1>, vector<8x128xf32>
    %314 = vector.extract_strided_slice %313 {offsets = [0, 0], sizes = [8, 32], strides = [1, 1]} : vector<8x128xf32> to vector<8x32xf32>
    %315 = vector.extract_strided_slice %313 {offsets = [0, 32], sizes = [8, 32], strides = [1, 1]} : vector<8x128xf32> to vector<8x32xf32>
    %316 = vector.extract_strided_slice %313 {offsets = [0, 64], sizes = [8, 32], strides = [1, 1]} : vector<8x128xf32> to vector<8x32xf32>
    %317 = vector.extract_strided_slice %313 {offsets = [0, 96], sizes = [8, 32], strides = [1, 1]} : vector<8x128xf32> to vector<8x32xf32>
    %318 = arith.mulf %315, %279 : vector<8x32xf32>
    %319 = arith.mulf %314, %316 : vector<8x32xf32>
    %320 = arith.addf %318, %319 : vector<8x32xf32>
    %321 = math.tanh %320 : vector<8x32xf32>
    %322 = arith.mulf %317, %321 : vector<8x32xf32>
    %cst_61 = arith.constant dense<0.000000e+00> : vector<8x128xf32>
    %323 = tpu.matmul %322, %1, %cst_61 {dimension_numbers = #tpu.dot_dimension_numbers<[1], [0], [0], [1], [0, 0, 1, 1], [], []>} : vector<8x32xf32>, vector<32x128xf32>, vector<8x128xf32> -> vector<8x128xf32>
    %324 = arith.addf %323, %301 : vector<8x128xf32>
    %325 = arith.negf %324 : vector<8x128xf32>
    %326 = math.exp %325 : vector<8x128xf32>
    %cst_62 = arith.constant 1.000000e+00 : f32
    %327 = vector.broadcast %cst_62 : f32 to vector<8x128xf32>
    %328 = arith.addf %327, %326 : vector<8x128xf32>
    %329 = arith.divf %327, %328 : vector<8x128xf32>
    %330 = math.tanh %324 : vector<8x128xf32>
    %331 = arith.select %11, %330, %329 : vector<8x128xi1>, vector<8x128xf32>
    %332 = vector.extract_strided_slice %331 {offsets = [0, 0], sizes = [8, 32], strides = [1, 1]} : vector<8x128xf32> to vector<8x32xf32>
    %333 = vector.extract_strided_slice %331 {offsets = [0, 32], sizes = [8, 32], strides = [1, 1]} : vector<8x128xf32> to vector<8x32xf32>
    %334 = vector.extract_strided_slice %331 {offsets = [0, 64], sizes = [8, 32], strides = [1, 1]} : vector<8x128xf32> to vector<8x32xf32>
    %335 = vector.extract_strided_slice %331 {offsets = [0, 96], sizes = [8, 32], strides = [1, 1]} : vector<8x128xf32> to vector<8x32xf32>
    %336 = arith.mulf %333, %297 : vector<8x32xf32>
    %337 = arith.mulf %332, %334 : vector<8x32xf32>
    %338 = arith.addf %336, %337 : vector<8x32xf32>
    %339 = math.tanh %338 : vector<8x32xf32>
    %340 = arith.mulf %335, %339 : vector<8x32xf32>
    %c8_i32 = arith.constant 8 : i32
    %c0_63 = arith.constant 0 : index
    %c0_64 = arith.constant 0 : index
    %341 = vector.load %arg6[%c0_63, %c0_64] : memref<32x128xf32, #tpu.memory_space<vmem>>, vector<32x128xf32>
    %cst_65 = arith.constant dense<0.000000e+00> : vector<8x128xf32>
    %342 = tpu.matmul %340, %341, %cst_65 {dimension_numbers = #tpu.dot_dimension_numbers<[1], [0], [0], [1], [0, 0, 1, 1], [], []>} : vector<8x32xf32>, vector<32x128xf32>, vector<8x128xf32> -> vector<8x128xf32>
    %c0_66 = arith.constant 0 : index
    %c0_67 = arith.constant 0 : index
    %343 = vector.load %arg7[%c0_66, %c0_67] : memref<1x128xf32, #tpu.memory_space<vmem>>, vector<1x128xf32>
    %344 = vector.broadcast %343 : vector<1x128xf32> to vector<8x128xf32>
    %345 = arith.addf %342, %344 : vector<8x128xf32>
    %346 = arith.negf %345 : vector<8x128xf32>
    %347 = math.exp %346 : vector<8x128xf32>
    %cst_68 = arith.constant 1.000000e+00 : f32
    %348 = vector.broadcast %cst_68 : f32 to vector<8x128xf32>
    %349 = arith.addf %348, %347 : vector<8x128xf32>
    %350 = arith.divf %348, %349 : vector<8x128xf32>
    %c0_69 = arith.constant 0 : index
    %c0_70 = arith.constant 0 : index
    %351 = vector.load %arg8[%c0_69, %c0_70] : memref<8x128xf32, #tpu.memory_space<vmem>>, vector<8x128xf32>
    tpu.vector_store %arg8[%c0_69, %c0_70], %350 {strides = array<i32>} : memref<8x128xf32, #tpu.memory_space<vmem>>, vector<8x128xf32>,
    return
  }
  func.func @transform_0(%arg0: i32) -> (i32, i32, i32) {
    %c0_i32 = arith.constant 0 : i32
    %c0_i32_0 = arith.constant 0 : i32
    %c0_i32_1 = arith.constant 0 : i32
    return %c0_i32, %arg0, %c0_i32_0 : i32, i32, i32
  }
  func.func @transform_1(%arg0: i32) -> (i32, i32) {
    %c0_i32 = arith.constant 0 : i32
    %c0_i32_0 = arith.constant 0 : i32
    %c0_i32_1 = arith.constant 0 : i32
    return %c0_i32, %c0_i32_0 : i32, i32
  }
  func.func @transform_2(%arg0: i32) -> (i32, i32) {
    %c0_i32 = arith.constant 0 : i32
    %c0_i32_0 = arith.constant 0 : i32
    %c0_i32_1 = arith.constant 0 : i32
    return %c0_i32, %c0_i32_0 : i32, i32
  }
  func.func @transform_3(%arg0: i32) -> (i32, i32) {
    %c0_i32 = arith.constant 0 : i32
    %c0_i32_0 = arith.constant 0 : i32
    %c0_i32_1 = arith.constant 0 : i32
    return %c0_i32, %c0_i32_0 : i32, i32
  }
  func.func @transform_4(%arg0: i32) -> (i32, i32) {
    %c0_i32 = arith.constant 0 : i32
    %c0_i32_0 = arith.constant 0 : i32
    %c0_i32_1 = arith.constant 0 : i32
    return %c0_i32, %c0_i32_0 : i32, i32
  }
  func.func @transform_5(%arg0: i32) -> (i32, i32) {
    %c0_i32 = arith.constant 0 : i32
    %c0_i32_0 = arith.constant 0 : i32
    %c0_i32_1 = arith.constant 0 : i32
    return %c0_i32, %c0_i32_0 : i32, i32
  }
  func.func @transform_6(%arg0: i32) -> (i32, i32) {
    %c0_i32 = arith.constant 0 : i32
    %c0_i32_0 = arith.constant 0 : i32
    %c0_i32_1 = arith.constant 0 : i32
    return %c0_i32, %c0_i32_0 : i32, i32
  }
  func.func @transform_7(%arg0: i32) -> (i32, i32) {
    %c0_i32 = arith.constant 0 : i32
    %c0_i32_0 = arith.constant 0 : i32
    return %arg0, %c0_i32 : i32, i32
  }
}

</mosaic_0001>

<bundles_post_ra>
// kernel: tpu_custom_call.1
= control target key start
LH: loop header
LB: loop body
LE: loop exit
PB: predicated region body
PF: predicated region fallthrough
CT: control target
= control target key end

     0   :  { %12 = vsyncpa [#allocation3], 0  ;;  %s3811_s0 = inlined_call_operand.hbm [shape: f32[8,8,128], index: 0, kind: input, shape index: {}]   ;;  %s3812_s1 = inlined_call_operand.hbm [shape: f32[32,128], index: 1, kind: input, shape index: {}]   ;;  %s3813_s2 = inlined_call_operand.hbm [shape: f32[32,128], index: 2, kind: input, shape index: {}]   ;;  %s3814_s3 = inlined_call_operand.hbm [shape: f32[32,128], index: 3, kind: input, shape index: {}]   ;;  %s3815_s4 = inlined_call_operand.vmem [shape: f32[1,128], index: 4, kind: input, shape index: {}]   ;;  %s3816_s5 = inlined_call_operand.hbm [shape: f32[32,128], index: 5, kind: input, shape index: {}]   ;;  %s3817_s6 = inlined_call_operand.vmem [shape: f32[1,128], index: 6, kind: input, shape index: {}]   ;;  %s3818_s7 = inlined_call_operand.hbm [shape: f32[8,128], index: 7, kind: output, shape index: {}]  }
   0x1   :  { %13 = vsyncpa [#allocation6], 0 }
   0x2   :  { %14 = vsyncpa [#allocation9], 0 }
   0x3   :  { %15 = vsyncpa [#allocation4], 0  ;;  %s3304_s24 = smov [#allocation5]   ;;  %s3305_s26 = smov [#allocation8]  }
   0x4   :  { %s33_s25 = sshll.u32 %s3304_s24, 4  ;;  %s57_s27 = sshll.u32 %s3305_s26, 4  ;;  %s34_s25 = int_to_ptr.vmem [resolvable:$true] %s33_s25  ;;  %s3357_s27 = int_to_ptr.vmem [resolvable:$true] %s57_s27 }
   0x5   :  { %s3164_s30 = scalar_lea.hbm %s3812_s1, 512 }
   0x6   :  { %p3165_p0 = scmp.ne.s32.totalorder %s3812_s1, %s3164_s30  ;;  %p3168_p1 = scmp.lt.u32.totalorder %s3164_s30, %s3812_s1 }
   0x8   :  { %p3170_p2 = pnand %p3168_p1, %p3165_p0 }
   0xa   :  { %3173 = shalt.err (!%p3170_p2)
}
   0xb   :  { %s3174_s12 = scalar_lea.vmem %s34_s25, 512  ;;  %p3179_p4 = scmp.lt.s32.totalorder %s34_s25, %s34_s25 }
   0xc   :  { %p3175_p3 = scmp.ne.s32.totalorder %s34_s25, %s3174_s12  ;;  %p3180_p5 = scmp.lt.s32.totalorder %s3174_s12, %s3174_s12 }
   0xe   :  { %p3181_p6 = por %p3180_p5, %p3179_p4 }
  0x10   :  { %p3182_p7 = pnand %p3181_p6, %p3175_p3 }
  0x12   :  { %3185 = shalt.err (!%p3182_p7)
}
  0x13   :  { %s3306_s13 = smov 128   ;;  %s3307_s14 = smov 8  }
  0x14   :  { %39 = dma.hbm_to_vmem [thread:$0]  %s3812_s1, 512, %s34_s25, [#allocation6], %s3306_s13, %s3306_s13, %s3307_s14  }
  0x15   :  { %s3186_s19 = scalar_lea.hbm %s3814_s3, 512 }
  0x16   :  { %p3187_p8 = scmp.ne.s32.totalorder %s3814_s3, %s3186_s19  ;;  %p3190_p9 = scmp.lt.u32.totalorder %s3186_s19, %s3814_s3 }
  0x18   :  { %p3192_p10 = pnand %p3190_p9, %p3187_p8 }
  0x1a   :  { %3195 = shalt.err (!%p3192_p10)
}
  0x1b   :  { %s3196_s24 = scalar_lea.vmem %s3357_s27, 512  ;;  %p3201_p12 = scmp.lt.s32.totalorder %s3357_s27, %s3357_s27 }
  0x1c   :  { %p3197_p11 = scmp.ne.s32.totalorder %s3357_s27, %s3196_s24  ;;  %p3202_p13 = scmp.lt.s32.totalorder %s3196_s24, %s3196_s24 }
  0x1e   :  { %p3203_p0 = por %p3202_p13, %p3201_p12 }
  0x20   :  { %p3204_p1 = pnand %p3203_p0, %p3197_p11 }
  0x22   :  { %3207 = shalt.err (!%p3204_p1)
}
  0x23   :  { %63 = dma.hbm_to_vmem [thread:$0]  %s3814_s3, 512, %s3357_s27, [#allocation9], %s3306_s13, %s3306_s13, %s3307_s14  }
  0x24   :  { %s3308_s26 = smov [#allocation2]   ;;  %s3309_s29 = smov [#allocation7]  }
  0x25   :  { %s21_s28 = sshll.u32 %s3308_s26, 4  ;;  %s45_s30 = sshll.u32 %s3309_s29, 4  ;;  %s22_s28 = int_to_ptr.vmem [resolvable:$true] %s21_s28  ;;  %s3394_s30 = int_to_ptr.vmem [resolvable:$true] %s45_s30 }
  0x26   :  { %s3208_s10 = scalar_lea.hbm %s3811_s0, 1024 }
  0x27   :  { %p3209_p2 = scmp.ne.s32.totalorder %s3811_s0, %s3208_s10  ;;  %p3212_p3 = scmp.lt.u32.totalorder %s3208_s10, %s3811_s0 }
  0x29   :  { %p3214_p4 = pnand %p3212_p3, %p3209_p2 }
  0x2b   :  { %3217 = shalt.err (!%p3214_p4)
}
  0x2c   :  { %s3218_s3 = scalar_lea.vmem %s22_s28, 1024  ;;  %p3223_p6 = scmp.lt.s32.totalorder %s22_s28, %s22_s28 }
  0x2d   :  { %p3219_p5 = scmp.ne.s32.totalorder %s22_s28, %s3218_s3  ;;  %p3224_p7 = scmp.lt.s32.totalorder %s3218_s3, %s3218_s3 }
  0x2f   :  { %p3225_p8 = por %p3224_p7, %p3223_p6 }
  0x31   :  { %p3226_p9 = pnand %p3225_p8, %p3219_p5 }
  0x33   :  { %3229 = shalt.err (!%p3226_p9)
}
  0x34   :  { %27 = dma.hbm_to_vmem [thread:$0]  %s3811_s0, 1024, %s22_s28, [#allocation3], %s3306_s13, %s3306_s13, %s3307_s14  }
  0x35   :  { %s3230_s20 = scalar_lea.hbm %s3813_s2, 512 }
  0x36   :  { %p3231_p10 = scmp.ne.s32.totalorder %s3813_s2, %s3230_s20  ;;  %p3234_p11 = scmp.lt.u32.totalorder %s3230_s20, %s3813_s2 }
  0x38   :  { %p3236_p12 = pnand %p3234_p11, %p3231_p10 }
  0x3a   :  { %3239 = shalt.err (!%p3236_p12)
}
  0x3b   :  { %s3240_s1 = scalar_lea.vmem %s3394_s30, 512  ;;  %p3245_p0 = scmp.lt.s32.totalorder %s3394_s30, %s3394_s30 }
  0x3c   :  { %p3241_p13 = scmp.ne.s32.totalorder %s3394_s30, %s3240_s1  ;;  %p3246_p1 = scmp.lt.s32.totalorder %s3240_s1, %s3240_s1 }
  0x3e   :  { %p3247_p2 = por %p3246_p1, %p3245_p0 }
  0x40   :  { %p3248_p3 = pnand %p3247_p2, %p3241_p13 }
  0x42   :  { %3251 = shalt.err (!%p3248_p3)
}
  0x43   :  { %51 = dma.hbm_to_vmem [thread:$0]  %s3813_s2, 512, %s3394_s30, [#allocation6], %s3306_s13, %s3306_s13, %s3307_s14  }
  0x44   :  { %s3310_s26 = smov [#allocation10]   ;;  %s3252_s9 = scalar_lea.hbm %s3816_s5, 512 }
  0x45   :  { %s71_s28 = sshll.u32 %s3310_s26, 4  ;;  %p3253_p4 = scmp.ne.s32.totalorder %s3816_s5, %s3252_s9  ;;  %s72_s28 = int_to_ptr.vmem [resolvable:$true] %s71_s28 }
  0x46   :  { %p3256_p5 = scmp.lt.u32.totalorder %s3252_s9, %s3816_s5 }
  0x48   :  { %p3258_p6 = pnand %p3256_p5, %p3253_p4 }
  0x4a   :  { %3261 = shalt.err (!%p3258_p6)
}
  0x4b   :  { %s3262_s16 = scalar_lea.vmem %s72_s28, 512  ;;  %p3267_p8 = scmp.lt.s32.totalorder %s72_s28, %s72_s28 }
  0x4c   :  { %p3263_p7 = scmp.ne.s32.totalorder %s72_s28, %s3262_s16  ;;  %p3268_p9 = scmp.lt.s32.totalorder %s3262_s16, %s3262_s16 }
  0x4e   :  { %p3269_p10 = por %p3268_p9, %p3267_p8 }
  0x50   :  { %p3270_p11 = pnand %p3269_p10, %p3263_p7 }
  0x52   :  { %3273 = shalt.err (!%p3270_p11)
}
  0x53   :  { %77 = dma.hbm_to_vmem [thread:$0]  %s3816_s5, 512, %s72_s28, [#allocation9], %s3306_s13, %s3306_s13, %s3307_s14  }
  0x54   :  { %3296 = dma.done.wait [#allocation3], 1024  }
  0x55   :  { %3297 = vsyncadd [#allocation3], 4294966272 }
  0x56   :  { %3298 = dma.done.wait [#allocation6], 1024  }
  0x57   :  { %3299 = vsyncadd [#allocation6], 4294966272 }
  0x58   :  { %3300 = dma.done.wait [#allocation9], 1024  }
  0x59   :  { %3301 = vsyncadd [#allocation9], 4294966272  ;;  %v3311_v0 = vmov 0.0|0.0   ;;  %vm3312_vm0 = vmmov 0   ;;  %v3313_v1 = vmov 0.0   ;;  %v95_v2 = vld [vmem:[#allocation5] sm:$0xff]  ;;  %v114_v14 = vlaneseq }
  0x5a   :  { %2851 = vmatprep.subr.bf16.mxu1 %v3311_v0  ;;  %2589 = vmatprep.mubr.msk.f32.mxu1 %vm3312_vm0, %v3313_v1  ;;  %v96_v3 = vld [vmem:[#allocation5 + $0x8] sm:$0xff]  ;;  %v97_v4 = vld [vmem:[#allocation5 + $0x10] sm:$0xff]  ;;  %v98_v6 = vld [vmem:[#allocation5 + $0x18] sm:$0xff]  ;;  %s3314_s5 = smov 64   ;;  %s3315_s13 = smov 32   ;;  %vm119_vm4 = vcmask 261120  }
  0x5b   :  { %2845 = vmatprep.subr.bf16.mxu0 %v3311_v0  ;;  %2578 = vmatprep.mubr.msk.f32.mxu0 %vm3312_vm0, %v3313_v1  ;;  %v3452_v5 = vpack.c.bf16 %v96_v3, %v95_v2  ;;  %v3455_v7 = vpack.c.bf16 %v98_v6, %v97_v4  ;;  %v193_v8 = vld [vmem:[#allocation2] sm:$0xff]  ;;  %v115_v16 = vand.u32 127, %v114_v14  ;;  %v104_v27 = vld [vmem:[#allocation8 + $0x8] sm:$0xff]  ;;  %v105_v28 = vld [vmem:[#allocation8 + $0x10] sm:$0xff]  ;;  %s3316_s17 = smov [#allocation11]  }
  0x5c   :  { %v103_v26 = vld [vmem:[#allocation8] sm:$0xff]  ;;  %v106_v30 = vld [vmem:[#allocation8 + $0x18] sm:$0xff]  ;;  %v100_v33 = vld [vmem:[#allocation7 + $0x8] sm:$0xff]  ;;  %s2392_s18 = sshll.u32 %s3316_s17, 4  ;;  %s2393_s18 = int_to_ptr.vmem [resolvable:$true] %s2392_s18 }
  0x5d   :  { %2853 = vmatpush3.bf16.msra.mxu1 %v3452_v5  ;;  %vm116_vm1 = vcmp.ge.s32.totalorder %v115_v16, 64  ;;  %vm117_vm2 = vcmp.lt.s32.totalorder %v115_v16, 96  ;;  %v3474_v29 = vpack.c.bf16 %v104_v27, %v103_v26  ;;  %v3477_v31 = vpack.c.bf16 %v106_v30, %v105_v28  ;;  %v99_v32 = vld [vmem:[#allocation7] sm:$0xff]  ;;  %v101_v35 = vld [vmem:[#allocation7 + $0x10] sm:$0xff]  ;;  %v102_v36 = vld [vmem:[#allocation7 + $0x18] sm:$0xff]  ;;  %s3274_s19 = scalar_lea.vmem %s2393_s18, 128  ;;  %p3279_p13 = scmp.lt.s32.totalorder %s2393_s18, %s2393_s18 }
  0x5e   :  { %2854 = vmatprep.subr.bf16.mxu1 %v3311_v0  ;;  %vm3463_vm3 = vmand %vm116_vm1, %vm117_vm2  ;;  %v3483_v34 = vpack.c.bf16 %v100_v33, %v99_v32  ;;  %v3491_v38 = vpack.c.bf16 %v102_v36, %v101_v35  ;;  %v3516_v42 = vld [vmem:[%s3815_s4] ss:$0 sm:$0xff]  ;;  %v465_v47 = vld [vmem:[#allocation2 + $0x8] sm:$0xff]  ;;  %p3275_p12 = scmp.ne.s32.totalorder %s2393_s18, %s3274_s19  ;;  %p3280_p0 = scmp.lt.s32.totalorder %s3274_s19, %s3274_s19 }
  0x5f   :  { %2847 = vmatpush3.bf16.msra.mxu0 %v3474_v29 }
  0x60   :  { %2848 = vmatprep.subr.bf16.mxu0 %v3311_v0  ;;  %p3281_p1 = por %p3280_p0, %p3279_p13 }
  0x61   :  { %2856 = vmatpush3.bf16.msra.mxu1 %v3455_v7 }
  0x62   :  { %2863 = vmatprep.subr.bf16.mxu1 %v3311_v0  ;;  %p3282_p2 = pnand %p3281_p1, %p3275_p12 }
  0x63   :  { %2850 = vmatpush3.bf16.msra.mxu0 %v3477_v31 }
  0x64   :  { %2590 = vmatmul.mubr.f32.vlgmr.msra.gmra.mrb[0].mxu1 %v3313_v1  ;;  %2857 = vmatprep.subr.bf16.mxu0 %v3311_v0 }
  0x65   :  { %2611 = vmatprep.mubr.msk.f32.mxu1 %vm3312_vm0, %v3313_v1  ;;  %2865 = vmatpush3.bf16.msra.mxu1 %v3474_v29 }
  0x66   :  { %2866 = vmatprep.subr.bf16.mxu1 %v3311_v0  ;;  %2579 = vmatmul.mubr.f32.vlgmr.msra.gmra.mrb[0].mxu0 %v3313_v1 }
  0x67   :  { %2859 = vmatpush3.bf16.msra.mxu0 %v3483_v34  ;;  %2600 = vmatprep.mubr.msk.f32.mxu0 %vm3312_vm0, %v3313_v1 }
  0x68   :  { %2860 = vmatprep.subr.bf16.mxu0 %v3311_v0 }
  0x69   :  { %2868 = vmatpush3.bf16.msra.mxu1 %v3477_v31 }
  0x6a   :  { %2875 = vmatprep.subr.bf16.mxu1 %v3311_v0 }
  0x6b   :  { %2862 = vmatpush3.bf16.msra.mxu0 %v3491_v38 }
  0x6c   :  { %2869 = vmatprep.subr.bf16.mxu0 %v3311_v0 }
 0x137   :  { %v260_v9 = vpop.f32.mrb[0].mxu1 }
 0x138   :  { %v261_v10 = vadd.f32 %v260_v9, %v193_v8  ;;  %v2591_v11 = vpop.f32.mrb[1].mxu1 }
 0x13a   :  { %v2404_v12 = vmul.f32 -1.442695, %v261_v10 }
 0x13c   :  { %3032 = vpow2.f32 %v2404_v12 }
 0x13d   :  { %3034 = vtanh.f32 %v261_v10 }
 0x146   :  { %v3033_v13 = vpop.eup %3032 }
 0x147   :  { %v267_v15 = vadd.f32 1.0, %v3033_v13  ;;  %v3035_v18 = vpop.eup %3034 }
 0x149   :  { %3036 = vrcp.f32 %v267_v15 }
 0x153   :  { %v3037_v19 = vpop.eup %3036 }
 0x154   :  { %v271_v20 = vsel %vm3463_vm3, %v3035_v18, %v3037_v19 }
 0x155   :  { %274 = vrot.lane.b32.xlu0 %v271_v20, %s3314_s5  ;;  %v272_v23 = vmul.f32 0.0, %v271_v20 }
 0x1c7   :  { %v275_v21 = vpop.permute.xlu0 %274 }
 0x1c8   :  { %v277_v22 = vmul.f32 %v275_v21, %v271_v20 }
 0x1ca   :  { %279 = vrot.lane.b32.xlu0 %v277_v22, %s3315_s13 }
 0x23c   :  { %v280_v24 = vpop.permute.xlu0 %279 }
 0x23d   :  { %v3471_v25 = vadd.f32 %v280_v24, %v272_v23 }
 0x23f   :  { %3038 = vtanh.f32 %v3471_v25 }
 0x249   :  { %v3039_v37 = vpop.eup %3038 }
 0x24a   :  { %285 = vrot.lane.b32.xlu1 %v3039_v37, %s3314_s5 }
 0x2bc   :  { %v286_v39 = vpop.permute.xlu1 %285 }
 0x2bd   :  { %v288_v40 = vmul.f32 %v286_v39, %v271_v20 }
 0x2bf   :  { %290 = vrot.lane.b32.xlu1 %v288_v40, %s3315_s13 }
 0x331   :  { %v291_v41 = vpop.permute.xlu1 %290 }
 0x332   :  { %2601 = vmatmul.mubr.msk.f32.vlgmr.msra.gmra.mrb[0].mxu0 %vm119_vm4, %v291_v41 }
 0x333   :  { %2871 = vmatpush3.bf16.msra.mxu0 %v3452_v5  ;;  %2622 = vmatprep.mubr.msk.f32.mxu0 %vm3312_vm0, %v3313_v1 }
 0x334   :  { %2872 = vmatprep.subr.bf16.mxu0 %v3311_v0 }
 0x337   :  { %2874 = vmatpush3.bf16.msra.mxu0 %v3455_v7 }
 0x338   :  { %2881 = vmatprep.subr.bf16.mxu0 %v3311_v0 }
 0x33a   :  { %2623 = vmatmul.mubr.msk.f32.vlgmr.msra.gmra.mrb[2].mxu0 %vm119_vm4, %v291_v41 }
 0x33b   :  { %2883 = vmatpush3.bf16.msra.mxu0 %v3474_v29  ;;  %2644 = vmatprep.mubr.msk.f32.mxu0 %vm3312_vm0, %v3313_v1 }
 0x33c   :  { %2884 = vmatprep.subr.bf16.mxu0 %v3311_v0 }
 0x33f   :  { %2886 = vmatpush3.bf16.msra.mxu0 %v3477_v31 }
 0x340   :  { %2893 = vmatprep.subr.bf16.mxu0 %v3311_v0 }
 0x405   :  { %v360_v43 = vpop.f32.mrb[0].mxu0 }
 0x406   :  { %v2995_v44 = vadd.f32 %v3516_v42, %v360_v43  ;;  %v2602_v45 = vpop.f32.mrb[1].mxu0 }
 0x408   :  { %v2406_v46 = vmul.f32 -1.442695, %v2995_v44 }
 0x40a   :  { %3040 = vpow2.f32 %v2406_v46 }
 0x40d   :  { %v532_v48 = vpop.f32.mrb[2].mxu0 }
 0x40e   :  { %v533_v49 = vadd.f32 %v532_v48, %v465_v47  ;;  %v2624_v50 = vpop.f32.mrb[3].mxu0 }
 0x410   :  { %v2409_v51 = vmul.f32 -1.442695, %v533_v49 }
 0x412   :  { %3042 = vpow2.f32 %v2409_v51 }
 0x413   :  { %3044 = vtanh.f32 %v2995_v44 }
 0x414   :  { %v3041_v52 = vpop.eup %3040 }
 0x415   :  { %v367_v53 = vadd.f32 1.0, %v3041_v52 }
 0x417   :  { %3046 = vrcp.f32 %v367_v53 }
 0x418   :  { %3048 = vtanh.f32 %v533_v49 }
 0x41c   :  { %v3043_v54 = vpop.eup %3042 }
 0x41d   :  { %v539_v55 = vadd.f32 1.0, %v3043_v54  ;;  %v3045_v56 = vpop.eup %3044 }
 0x41f   :  { %3050 = vrcp.f32 %v539_v55 }
 0x421   :  { %v3047_v57 = vpop.eup %3046 }
 0x422   :  { %v371_v58 = vsel %vm3463_vm3, %v3045_v56, %v3047_v57  ;;  %v3049_v59 = vpop.eup %3048 }
 0x423   :  { %374 = vrot.lane.b32.xlu0 %v371_v58, %s3314_s5  ;;  %v372_v4 = vmul.f32 0.0, %v371_v58 }
 0x429   :  { %v3051_v60 = vpop.eup %3050 }
 0x42a   :  { %v543_v61 = vsel %vm3463_vm3, %v3049_v59, %v3051_v60 }
 0x42b   :  { %546 = vrot.lane.b32.xlu1 %v543_v61, %s3314_s5  ;;  %v544_v9 = vmul.f32 %v543_v61, %v3471_v25  ;;  %v737_v25 = vld [vmem:[#allocation2 + $0x10] sm:$0xff] }
 0x495   :  { %v375_v62 = vpop.permute.xlu0 %374 }
 0x496   :  { %v377_v63 = vmul.f32 %v375_v62, %v371_v58 }
 0x498   :  { %379 = vrot.lane.b32.xlu0 %v377_v63, %s3315_s13 }
 0x49d   :  { %v547_v2 = vpop.permute.xlu1 %546 }
 0x49e   :  { %v549_v3 = vmul.f32 %v547_v2, %v543_v61 }
 0x4a0   :  { %551 = vrot.lane.b32.xlu1 %v549_v3, %s3315_s13 }
 0x50a   :  { %v380_v6 = vpop.permute.xlu0 %379 }
 0x50b   :  { %v3527_v8 = vadd.f32 %v380_v6, %v372_v4  ;;  %v1009_v6 = vld [vmem:[#allocation2 + $0x18] sm:$0xff] }
 0x50d   :  { %3052 = vtanh.f32 %v3527_v8 }
 0x512   :  { %v552_v10 = vpop.permute.xlu1 %551 }
 0x513   :  { %v3531_v11 = vadd.f32 %v552_v10, %v544_v9 }
 0x515   :  { %3054 = vtanh.f32 %v3531_v11 }
 0x517   :  { %v3053_v12 = vpop.eup %3052 }
 0x518   :  { %385 = vrot.lane.b32.xlu0 %v3053_v12, %s3314_s5 }
 0x51f   :  { %v3055_v13 = vpop.eup %3054 }
 0x520   :  { %557 = vrot.lane.b32.xlu1 %v3055_v13, %s3314_s5 }
 0x58a   :  { %v386_v14 = vpop.permute.xlu0 %385 }
 0x58b   :  { %v388_v15 = vmul.f32 %v386_v14, %v371_v58 }
 0x58d   :  { %390 = vrot.lane.b32.xlu0 %v388_v15, %s3315_s13 }
 0x592   :  { %v558_v16 = vpop.permute.xlu1 %557 }
 0x593   :  { %v560_v18 = vmul.f32 %v558_v16, %v543_v61 }
 0x595   :  { %562 = vrot.lane.b32.xlu1 %v560_v18, %s3315_s13 }
 0x5ff   :  { %v391_v19 = vpop.permute.xlu0 %390 }
 0x600   :  { %2612 = vmatmul.mubr.msk.f32.vlgmr.msra.gmra.mrb[2].mxu1 %vm119_vm4, %v391_v19 }
 0x601   :  { %2877 = vmatpush3.bf16.msra.mxu1 %v3483_v34  ;;  %2633 = vmatprep.mubr.msk.f32.mxu1 %vm3312_vm0, %v3313_v1 }
 0x602   :  { %2878 = vmatprep.subr.bf16.mxu1 %v3311_v0 }
 0x605   :  { %2880 = vmatpush3.bf16.msra.mxu1 %v3491_v38 }
 0x606   :  { %2887 = vmatprep.subr.bf16.mxu1 %v3311_v0 }
 0x607   :  { %v563_v20 = vpop.permute.xlu1 %562 }
 0x608   :  { %2634 = vmatmul.mubr.msk.f32.vlgmr.msra.gmra.mrb[2].mxu1 %vm119_vm4, %v563_v20 }
 0x609   :  { %2889 = vmatpush3.bf16.msra.mxu1 %v3452_v5  ;;  %2655 = vmatprep.mubr.msk.f32.mxu1 %vm3312_vm0, %v3313_v1 }
 0x60a   :  { %2890 = vmatprep.subr.bf16.mxu1 %v3311_v0 }
 0x60d   :  { %2892 = vmatpush3.bf16.msra.mxu1 %v3455_v7 }
 0x60e   :  { %2899 = vmatprep.subr.bf16.mxu1 %v3311_v0 }
 0x610   :  { %2656 = vmatmul.mubr.msk.f32.vlgmr.msra.gmra.mrb[4].mxu1 %vm119_vm4, %v563_v20 }
 0x611   :  { %2901 = vmatpush3.bf16.msra.mxu1 %v3474_v29  ;;  %2677 = vmatprep.mubr.msk.f32.mxu1 %vm3312_vm0, %v3313_v1 }
 0x612   :  { %2902 = vmatprep.subr.bf16.mxu1 %v3311_v0 }
 0x615   :  { %2904 = vmatpush3.bf16.msra.mxu1 %v3477_v31 }
 0x616   :  { %2911 = vmatprep.subr.bf16.mxu1 %v3311_v0 }
 0x6db   :  { %v632_v21 = vpop.f32.mrb[2].mxu1 }
 0x6dc   :  { %v2996_v22 = vadd.f32 %v3516_v42, %v632_v21  ;;  %v2635_v23 = vpop.f32.mrb[3].mxu1 }
 0x6de   :  { %v2411_v24 = vmul.f32 -1.442695, %v2996_v22 }
 0x6e0   :  { %3056 = vpow2.f32 %v2411_v24 }
 0x6e3   :  { %v804_v26 = vpop.f32.mrb[4].mxu1 }
 0x6e4   :  { %v805_v27 = vadd.f32 %v804_v26, %v737_v25  ;;  %v2657_v28 = vpop.f32.mrb[5].mxu1 }
 0x6e6   :  { %v2414_v30 = vmul.f32 -1.442695, %v805_v27 }
 0x6e8   :  { %3058 = vpow2.f32 %v2414_v30 }
 0x6e9   :  { %3060 = vtanh.f32 %v2996_v22 }
 0x6ea   :  { %v3057_v32 = vpop.eup %3056 }
 0x6eb   :  { %v639_v33 = vadd.f32 1.0, %v3057_v32 }
 0x6ed   :  { %3062 = vrcp.f32 %v639_v33 }
 0x6ee   :  { %3064 = vtanh.f32 %v805_v27 }
 0x6f2   :  { %v3059_v35 = vpop.eup %3058 }
 0x6f3   :  { %v811_v36 = vadd.f32 1.0, %v3059_v35  ;;  %v3061_v37 = vpop.eup %3060 }
 0x6f5   :  { %3066 = vrcp.f32 %v811_v36 }
 0x6f7   :  { %v3063_v39 = vpop.eup %3062 }
 0x6f8   :  { %v643_v40 = vsel %vm3463_vm3, %v3061_v37, %v3063_v39  ;;  %v3065_v41 = vpop.eup %3064 }
 0x6f9   :  { %646 = vrot.lane.b32.xlu0 %v643_v40, %s3314_s5  ;;  %v644_v49 = vmul.f32 %v643_v40, %v3527_v8 }
 0x6ff   :  { %v3067_v43 = vpop.eup %3066 }
 0x700   :  { %v815_v44 = vsel %vm3463_vm3, %v3065_v41, %v3067_v43 }
 0x701   :  { %818 = vrot.lane.b32.xlu1 %v815_v44, %s3314_s5  ;;  %v816_v52 = vmul.f32 %v815_v44, %v3531_v11 }
 0x76b   :  { %v647_v45 = vpop.permute.xlu0 %646 }
 0x76c   :  { %v649_v46 = vmul.f32 %v647_v45, %v643_v40 }
 0x76e   :  { %651 = vrot.lane.b32.xlu0 %v649_v46, %s3315_s13 }
 0x773   :  { %v819_v47 = vpop.permute.xlu1 %818 }
 0x774   :  { %v821_v48 = vmul.f32 %v819_v47, %v815_v44 }
 0x776   :  { %823 = vrot.lane.b32.xlu1 %v821_v48, %s3315_s13 }
 0x7e0   :  { %v652_v50 = vpop.permute.xlu0 %651 }
 0x7e1   :  { %v3569_v51 = vadd.f32 %v652_v50, %v644_v49  ;;  %v1281_v50 = vld [vmem:[#allocation2 + $0x20] sm:$0xff] }
 0x7e3   :  { %3068 = vtanh.f32 %v3569_v51 }
 0x7e8   :  { %v824_v53 = vpop.permute.xlu1 %823 }
 0x7e9   :  { %v3573_v54 = vadd.f32 %v824_v53, %v816_v52 }
 0x7eb   :  { %3070 = vtanh.f32 %v3573_v54 }
 0x7ed   :  { %v3069_v55 = vpop.eup %3068 }
 0x7ee   :  { %657 = vrot.lane.b32.xlu0 %v3069_v55, %s3314_s5 }
 0x7f5   :  { %v3071_v56 = vpop.eup %3070 }
 0x7f6   :  { %829 = vrot.lane.b32.xlu1 %v3071_v56, %s3314_s5 }
 0x860   :  { %v658_v57 = vpop.permute.xlu0 %657 }
 0x861   :  { %v660_v58 = vmul.f32 %v658_v57, %v643_v40 }
 0x863   :  { %662 = vrot.lane.b32.xlu0 %v660_v58, %s3315_s13 }
 0x868   :  { %v830_v59 = vpop.permute.xlu1 %829 }
 0x869   :  { %v832_v60 = vmul.f32 %v830_v59, %v815_v44 }
 0x86b   :  { %834 = vrot.lane.b32.xlu1 %v832_v60, %s3315_s13 }
 0x8d5   :  { %v663_v61 = vpop.permute.xlu0 %662 }
 0x8d6   :  { %2645 = vmatmul.mubr.msk.f32.vlgmr.msra.gmra.mrb[4].mxu0 %vm119_vm4, %v663_v61 }
 0x8d7   :  { %2895 = vmatpush3.bf16.msra.mxu0 %v3483_v34  ;;  %2666 = vmatprep.mubr.msk.f32.mxu0 %vm3312_vm0, %v3313_v1 }
 0x8d8   :  { %2896 = vmatprep.subr.bf16.mxu0 %v3311_v0 }
 0x8db   :  { %2898 = vmatpush3.bf16.msra.mxu0 %v3491_v38 }
 0x8dc   :  { %2905 = vmatprep.subr.bf16.mxu0 %v3311_v0 }
 0x8dd   :  { %v835_v62 = vpop.permute.xlu1 %834 }
 0x8de   :  { %2667 = vmatmul.mubr.msk.f32.vlgmr.msra.gmra.mrb[4].mxu0 %vm119_vm4, %v835_v62 }
 0x8df   :  { %2907 = vmatpush3.bf16.msra.mxu0 %v3452_v5  ;;  %2688 = vmatprep.mubr.msk.f32.mxu0 %vm3312_vm0, %v3313_v1 }
 0x8e0   :  { %2908 = vmatprep.subr.bf16.mxu0 %v3311_v0 }
 0x8e3   :  { %2910 = vmatpush3.bf16.msra.mxu0 %v3455_v7 }
 0x8e4   :  { %2917 = vmatprep.subr.bf16.mxu0 %v3311_v0 }
 0x8e6   :  { %2689 = vmatmul.mubr.msk.f32.vlgmr.msra.gmra.mrb[6].mxu0 %vm119_vm4, %v835_v62 }
 0x8e7   :  { %2919 = vmatpush3.bf16.msra.mxu0 %v3474_v29  ;;  %2710 = vmatprep.mubr.msk.f32.mxu0 %vm3312_vm0, %v3313_v1 }
 0x8e8   :  { %2920 = vmatprep.subr.bf16.mxu0 %v3311_v0 }
 0x8eb   :  { %2922 = vmatpush3.bf16.msra.mxu0 %v3477_v31 }
 0x8ec   :  { %2929 = vmatprep.subr.bf16.mxu0 %v3311_v0 }
 0x9b1   :  { %v904_v63 = vpop.f32.mrb[4].mxu0 }
 0x9b2   :  { %v2997_v2 = vadd.f32 %v3516_v42, %v904_v63  ;;  %v2668_v3 = vpop.f32.mrb[5].mxu0 }
 0x9b4   :  { %v2416_v4 = vmul.f32 -1.442695, %v2997_v2 }
 0x9b6   :  { %3072 = vpow2.f32 %v2416_v4 }
 0x9b9   :  { %v1076_v8 = vpop.f32.mrb[6].mxu0 }
 0x9ba   :  { %v1077_v9 = vadd.f32 %v1076_v8, %v1009_v6  ;;  %v2690_v10 = vpop.f32.mrb[7].mxu0 }
 0x9bc   :  { %v2419_v11 = vmul.f32 -1.442695, %v1077_v9 }
 0x9be   :  { %3074 = vpow2.f32 %v2419_v11 }
 0x9bf   :  { %3076 = vtanh.f32 %v2997_v2 }
 0x9c0   :  { %v3073_v12 = vpop.eup %3072 }
 0x9c1   :  { %v911_v13 = vadd.f32 1.0, %v3073_v12 }
 0x9c3   :  { %3078 = vrcp.f32 %v911_v13 }
 0x9c4   :  { %3080 = vtanh.f32 %v1077_v9 }
 0x9c8   :  { %v3075_v14 = vpop.eup %3074 }
 0x9c9   :  { %v1083_v15 = vadd.f32 1.0, %v3075_v14  ;;  %v3077_v16 = vpop.eup %3076 }
 0x9cb   :  { %3082 = vrcp.f32 %v1083_v15 }
 0x9cd   :  { %v3079_v18 = vpop.eup %3078 }
 0x9ce   :  { %v915_v19 = vsel %vm3463_vm3, %v3077_v16, %v3079_v18  ;;  %v3081_v20 = vpop.eup %3080 }
 0x9cf   :  { %918 = vrot.lane.b32.xlu0 %v915_v19, %s3314_s5  ;;  %v916_v27 = vmul.f32 %v915_v19, %v3569_v51 }
 0x9d5   :  { %v3083_v21 = vpop.eup %3082 }
 0x9d6   :  { %v1087_v22 = vsel %vm3463_vm3, %v3081_v20, %v3083_v21 }
 0x9d7   :  { %1090 = vrot.lane.b32.xlu1 %v1087_v22, %s3314_s5  ;;  %v1088_v32 = vmul.f32 %v1087_v22, %v3573_v54 }
 0xa41   :  { %v919_v23 = vpop.permute.xlu0 %918 }
 0xa42   :  { %v921_v24 = vmul.f32 %v919_v23, %v915_v19 }
 0xa44   :  { %923 = vrot.lane.b32.xlu0 %v921_v24, %s3315_s13 }
 0xa49   :  { %v1091_v25 = vpop.permute.xlu1 %1090 }
 0xa4a   :  { %v1093_v26 = vmul.f32 %v1091_v25, %v1087_v22 }
 0xa4c   :  { %1095 = vrot.lane.b32.xlu1 %v1093_v26, %s3315_s13 }
 0xab6   :  { %v924_v28 = vpop.permute.xlu0 %923 }
 0xab7   :  { %v3611_v30 = vadd.f32 %v924_v28, %v916_v27  ;;  %v1553_v28 = vld [vmem:[#allocation2 + $0x28] sm:$0xff] }
 0xab9   :  { %3084 = vtanh.f32 %v3611_v30 }
 0xabe   :  { %v1096_v33 = vpop.permute.xlu1 %1095 }
 0xabf   :  { %v3615_v35 = vadd.f32 %v1096_v33, %v1088_v32 }
 0xac1   :  { %3086 = vtanh.f32 %v3615_v35 }
 0xac3   :  { %v3085_v36 = vpop.eup %3084 }
 0xac4   :  { %929 = vrot.lane.b32.xlu0 %v3085_v36, %s3314_s5 }
 0xacb   :  { %v3087_v37 = vpop.eup %3086 }
 0xacc   :  { %1101 = vrot.lane.b32.xlu1 %v3087_v37, %s3314_s5 }
 0xb36   :  { %v930_v39 = vpop.permute.xlu0 %929 }
 0xb37   :  { %v932_v40 = vmul.f32 %v930_v39, %v915_v19 }
 0xb39   :  { %934 = vrot.lane.b32.xlu0 %v932_v40, %s3315_s13 }
 0xb3e   :  { %v1102_v41 = vpop.permute.xlu1 %1101 }
 0xb3f   :  { %v1104_v43 = vmul.f32 %v1102_v41, %v1087_v22 }
 0xb41   :  { %1106 = vrot.lane.b32.xlu1 %v1104_v43, %s3315_s13 }
 0xbab   :  { %v935_v44 = vpop.permute.xlu0 %934 }
 0xbac   :  { %2678 = vmatmul.mubr.msk.f32.vlgmr.msra.gmra.mrb[6].mxu1 %vm119_vm4, %v935_v44 }
 0xbad   :  { %2913 = vmatpush3.bf16.msra.mxu1 %v3483_v34  ;;  %2699 = vmatprep.mubr.msk.f32.mxu1 %vm3312_vm0, %v3313_v1 }
 0xbae   :  { %2914 = vmatprep.subr.bf16.mxu1 %v3311_v0 }
 0xbb1   :  { %2916 = vmatpush3.bf16.msra.mxu1 %v3491_v38 }
 0xbb2   :  { %2923 = vmatprep.subr.bf16.mxu1 %v3311_v0 }
 0xbb3   :  { %v1107_v45 = vpop.permute.xlu1 %1106 }
 0xbb4   :  { %2700 = vmatmul.mubr.msk.f32.vlgmr.msra.gmra.mrb[6].mxu1 %vm119_vm4, %v1107_v45 }
 0xbb5   :  { %2925 = vmatpush3.bf16.msra.mxu1 %v3452_v5  ;;  %2721 = vmatprep.mubr.msk.f32.mxu1 %vm3312_vm0, %v3313_v1 }
 0xbb6   :  { %2926 = vmatprep.subr.bf16.mxu1 %v3311_v0 }
 0xbb9   :  { %2928 = vmatpush3.bf16.msra.mxu1 %v3455_v7 }
 0xbba   :  { %2935 = vmatprep.subr.bf16.mxu1 %v3311_v0 }
 0xbbc   :  { %2722 = vmatmul.mubr.msk.f32.vlgmr.msra.gmra.mrb[8].mxu1 %vm119_vm4, %v1107_v45 }
 0xbbd   :  { %2937 = vmatpush3.bf16.msra.mxu1 %v3474_v29  ;;  %2743 = vmatprep.mubr.msk.f32.mxu1 %vm3312_vm0, %v3313_v1 }
 0xbbe   :  { %2938 = vmatprep.subr.bf16.mxu1 %v3311_v0 }
 0xbc1   :  { %2940 = vmatpush3.bf16.msra.mxu1 %v3477_v31 }
 0xbc2   :  { %2947 = vmatprep.subr.bf16.mxu1 %v3311_v0 }
 0xc87   :  { %v1176_v46 = vpop.f32.mrb[6].mxu1 }
 0xc88   :  { %v2998_v47 = vadd.f32 %v3516_v42, %v1176_v46  ;;  %v2701_v48 = vpop.f32.mrb[7].mxu1 }
 0xc8a   :  { %v2421_v49 = vmul.f32 -1.442695, %v2998_v47 }
 0xc8c   :  { %3088 = vpow2.f32 %v2421_v49 }
 0xc8f   :  { %v1348_v51 = vpop.f32.mrb[8].mxu1 }
 0xc90   :  { %v1349_v52 = vadd.f32 %v1348_v51, %v1281_v50  ;;  %v2723_v53 = vpop.f32.mrb[9].mxu1 }
 0xc92   :  { %v2424_v54 = vmul.f32 -1.442695, %v1349_v52 }
 0xc94   :  { %3090 = vpow2.f32 %v2424_v54 }
 0xc95   :  { %3092 = vtanh.f32 %v2998_v47 }
 0xc96   :  { %v3089_v55 = vpop.eup %3088 }
 0xc97   :  { %v1183_v56 = vadd.f32 1.0, %v3089_v55 }
 0xc99   :  { %3094 = vrcp.f32 %v1183_v56 }
 0xc9a   :  { %3096 = vtanh.f32 %v1349_v52 }
 0xc9e   :  { %v3091_v57 = vpop.eup %3090 }
 0xc9f   :  { %v1355_v58 = vadd.f32 1.0, %v3091_v57  ;;  %v3093_v59 = vpop.eup %3092 }
 0xca1   :  { %3098 = vrcp.f32 %v1355_v58 }
 0xca3   :  { %v3095_v60 = vpop.eup %3094 }
 0xca4   :  { %v1187_v61 = vsel %vm3463_vm3, %v3093_v59, %v3095_v60  ;;  %v3097_v62 = vpop.eup %3096 }
 0xca5   :  { %1190 = vrot.lane.b32.xlu0 %v1187_v61, %s3314_s5  ;;  %v1188_v9 = vmul.f32 %v1187_v61, %v3611_v30 }
 0xcab   :  { %v3099_v63 = vpop.eup %3098 }
 0xcac   :  { %v1359_v2 = vsel %vm3463_vm3, %v3097_v62, %v3099_v63 }
 0xcad   :  { %1362 = vrot.lane.b32.xlu1 %v1359_v2, %s3314_s5  ;;  %v1360_v12 = vmul.f32 %v1359_v2, %v3615_v35 }
 0xd17   :  { %v1191_v3 = vpop.permute.xlu0 %1190 }
 0xd18   :  { %v1193_v4 = vmul.f32 %v1191_v3, %v1187_v61 }
 0xd1a   :  { %1195 = vrot.lane.b32.xlu0 %v1193_v4, %s3315_s13 }
 0xd1f   :  { %v1363_v6 = vpop.permute.xlu1 %1362 }
 0xd20   :  { %v1365_v8 = vmul.f32 %v1363_v6, %v1359_v2 }
 0xd22   :  { %1367 = vrot.lane.b32.xlu1 %v1365_v8, %s3315_s13 }
 0xd8c   :  { %v1196_v10 = vpop.permute.xlu0 %1195 }
 0xd8d   :  { %v3653_v11 = vadd.f32 %v1196_v10, %v1188_v9  ;;  %v1825_v10 = vld [vmem:[#allocation2 + $0x30] sm:$0xff] }
 0xd8f   :  { %3100 = vtanh.f32 %v3653_v11 }
 0xd94   :  { %v1368_v13 = vpop.permute.xlu1 %1367 }
 0xd95   :  { %v3657_v14 = vadd.f32 %v1368_v13, %v1360_v12 }
 0xd97   :  { %3102 = vtanh.f32 %v3657_v14 }
 0xd99   :  { %v3101_v15 = vpop.eup %3100 }
 0xd9a   :  { %1201 = vrot.lane.b32.xlu0 %v3101_v15, %s3314_s5 }
 0xda1   :  { %v3103_v16 = vpop.eup %3102 }
 0xda2   :  { %1373 = vrot.lane.b32.xlu1 %v3103_v16, %s3314_s5 }
 0xe0c   :  { %v1202_v18 = vpop.permute.xlu0 %1201 }
 0xe0d   :  { %v1204_v19 = vmul.f32 %v1202_v18, %v1187_v61 }
 0xe0f   :  { %1206 = vrot.lane.b32.xlu0 %v1204_v19, %s3315_s13 }
 0xe14   :  { %v1374_v20 = vpop.permute.xlu1 %1373 }
 0xe15   :  { %v1376_v21 = vmul.f32 %v1374_v20, %v1359_v2 }
 0xe17   :  { %1378 = vrot.lane.b32.xlu1 %v1376_v21, %s3315_s13 }
 0xe81   :  { %v1207_v22 = vpop.permute.xlu0 %1206 }
 0xe82   :  { %2711 = vmatmul.mubr.msk.f32.vlgmr.msra.gmra.mrb[8].mxu0 %vm119_vm4, %v1207_v22 }
 0xe83   :  { %2931 = vmatpush3.bf16.msra.mxu0 %v3483_v34  ;;  %2732 = vmatprep.mubr.msk.f32.mxu0 %vm3312_vm0, %v3313_v1 }
 0xe84   :  { %2932 = vmatprep.subr.bf16.mxu0 %v3311_v0 }
 0xe87   :  { %2934 = vmatpush3.bf16.msra.mxu0 %v3491_v38 }
 0xe88   :  { %2941 = vmatprep.subr.bf16.mxu0 %v3311_v0 }
 0xe89   :  { %v1379_v23 = vpop.permute.xlu1 %1378 }
 0xe8a   :  { %2733 = vmatmul.mubr.msk.f32.vlgmr.msra.gmra.mrb[8].mxu0 %vm119_vm4, %v1379_v23 }
 0xe8b   :  { %2943 = vmatpush3.bf16.msra.mxu0 %v3452_v5  ;;  %2754 = vmatprep.mubr.msk.f32.mxu0 %vm3312_vm0, %v3313_v1 }
 0xe8c   :  { %2944 = vmatprep.subr.bf16.mxu0 %v3311_v0 }
 0xe8f   :  { %2946 = vmatpush3.bf16.msra.mxu0 %v3455_v7 }
 0xe90   :  { %2953 = vmatprep.subr.bf16.mxu0 %v3311_v0 }
 0xe92   :  { %2755 = vmatmul.mubr.msk.f32.vlgmr.msra.gmra.mrb[10].mxu0 %vm119_vm4, %v1379_v23 }
 0xe93   :  { %2955 = vmatpush3.bf16.msra.mxu0 %v3474_v29  ;;  %2776 = vmatprep.mubr.msk.f32.mxu0 %vm3312_vm0, %v3313_v1 }
 0xe94   :  { %2956 = vmatprep.subr.bf16.mxu0 %v3311_v0 }
 0xe97   :  { %2958 = vmatpush3.bf16.msra.mxu0 %v3477_v31 }
 0xe98   :  { %2965 = vmatprep.subr.bf16.mxu0 %v3311_v0 }
 0xf5d   :  { %v1448_v24 = vpop.f32.mrb[8].mxu0 }
 0xf5e   :  { %v2999_v25 = vadd.f32 %v3516_v42, %v1448_v24  ;;  %v2734_v26 = vpop.f32.mrb[9].mxu0 }
 0xf60   :  { %v2426_v27 = vmul.f32 -1.442695, %v2999_v25 }
 0xf62   :  { %3104 = vpow2.f32 %v2426_v27 }
 0xf65   :  { %v1620_v30 = vpop.f32.mrb[10].mxu0 }
 0xf66   :  { %v1621_v32 = vadd.f32 %v1620_v30, %v1553_v28  ;;  %v2756_v33 = vpop.f32.mrb[11].mxu0 }
 0xf68   :  { %v2429_v35 = vmul.f32 -1.442695, %v1621_v32 }
 0xf6a   :  { %3106 = vpow2.f32 %v2429_v35 }
 0xf6b   :  { %3108 = vtanh.f32 %v2999_v25 }
 0xf6c   :  { %v3105_v36 = vpop.eup %3104 }
 0xf6d   :  { %v1455_v37 = vadd.f32 1.0, %v3105_v36 }
 0xf6f   :  { %3110 = vrcp.f32 %v1455_v37 }
 0xf70   :  { %3112 = vtanh.f32 %v1621_v32 }
 0xf74   :  { %v3107_v39 = vpop.eup %3106 }
 0xf75   :  { %v1627_v40 = vadd.f32 1.0, %v3107_v39  ;;  %v3109_v41 = vpop.eup %3108 }
 0xf77   :  { %3114 = vrcp.f32 %v1627_v40 }
 0xf79   :  { %v3111_v43 = vpop.eup %3110 }
 0xf7a   :  { %v1459_v44 = vsel %vm3463_vm3, %v3109_v41, %v3111_v43  ;;  %v3113_v45 = vpop.eup %3112 }
 0xf7b   :  { %1462 = vrot.lane.b32.xlu0 %v1459_v44, %s3314_s5  ;;  %v1460_v52 = vmul.f32 %v1459_v44, %v3653_v11 }
 0xf81   :  { %v3115_v46 = vpop.eup %3114 }
 0xf82   :  { %v1631_v47 = vsel %vm3463_vm3, %v3113_v45, %v3115_v46 }
 0xf83   :  { %1634 = vrot.lane.b32.xlu1 %v1631_v47, %s3314_s5  ;;  %v1632_v55 = vmul.f32 %v1631_v47, %v3657_v14 }
 0xfed   :  { %v1463_v48 = vpop.permute.xlu0 %1462 }
 0xfee   :  { %v1465_v49 = vmul.f32 %v1463_v48, %v1459_v44 }
 0xff0   :  { %1467 = vrot.lane.b32.xlu0 %v1465_v49, %s3315_s13 }
 0xff5   :  { %v1635_v50 = vpop.permute.xlu1 %1634 }
 0xff6   :  { %v1637_v51 = vmul.f32 %v1635_v50, %v1631_v47 }
 0xff8   :  { %1639 = vrot.lane.b32.xlu1 %v1637_v51, %s3315_s13 }
0x1062   :  { %v1468_v53 = vpop.permute.xlu0 %1467 }
0x1063   :  { %v3695_v54 = vadd.f32 %v1468_v53, %v1460_v52 }
0x1065   :  { %3116 = vtanh.f32 %v3695_v54 }
0x106a   :  { %v1640_v56 = vpop.permute.xlu1 %1639 }
0x106b   :  { %v3699_v57 = vadd.f32 %v1640_v56, %v1632_v55 }
0x106d   :  { %3118 = vtanh.f32 %v3699_v57 }
0x106f   :  { %v3117_v58 = vpop.eup %3116 }
0x1070   :  { %1473 = vrot.lane.b32.xlu0 %v3117_v58, %s3314_s5 }
0x1077   :  { %v3119_v59 = vpop.eup %3118 }
0x1078   :  { %1645 = vrot.lane.b32.xlu1 %v3119_v59, %s3314_s5 }
0x10e2   :  { %v1474_v60 = vpop.permute.xlu0 %1473 }
0x10e3   :  { %v1476_v61 = vmul.f32 %v1474_v60, %v1459_v44 }
0x10e5   :  { %1478 = vrot.lane.b32.xlu0 %v1476_v61, %s3315_s13 }
0x10ea   :  { %v1646_v62 = vpop.permute.xlu1 %1645 }
0x10eb   :  { %v1648_v63 = vmul.f32 %v1646_v62, %v1631_v47 }
0x10ed   :  { %1650 = vrot.lane.b32.xlu1 %v1648_v63, %s3315_s13 }
0x1157   :  { %v1479_v2 = vpop.permute.xlu0 %1478 }
0x1158   :  { %2744 = vmatmul.mubr.msk.f32.vlgmr.msra.gmra.mrb[10].mxu1 %vm119_vm4, %v1479_v2 }
0x1159   :  { %2949 = vmatpush3.bf16.msra.mxu1 %v3483_v34  ;;  %2765 = vmatprep.mubr.msk.f32.mxu1 %vm3312_vm0, %v3313_v1 }
0x115a   :  { %2950 = vmatprep.subr.bf16.mxu1 %v3311_v0 }
0x115d   :  { %2952 = vmatpush3.bf16.msra.mxu1 %v3491_v38 }
0x115e   :  { %2959 = vmatprep.subr.bf16.mxu1 %v3311_v0 }
0x115f   :  { %v1651_v3 = vpop.permute.xlu1 %1650 }
0x1160   :  { %2766 = vmatmul.mubr.msk.f32.vlgmr.msra.gmra.mrb[10].mxu1 %vm119_vm4, %v1651_v3 }
0x1161   :  { %2961 = vmatpush3.bf16.msra.mxu1 %v3452_v5  ;;  %2787 = vmatprep.mubr.msk.f32.mxu1 %vm3312_vm0, %v3313_v1 }
0x1162   :  { %2962 = vmatprep.subr.bf16.mxu1 %v3311_v0 }
0x1165   :  { %2964 = vmatpush3.bf16.msra.mxu1 %v3455_v7 }
0x1166   :  { %2971 = vmatprep.subr.bf16.mxu1 %v3311_v0 }
0x1168   :  { %2788 = vmatmul.mubr.msk.f32.vlgmr.msra.gmra.mrb[12].mxu1 %vm119_vm4, %v1651_v3 }
0x1169   :  { %2973 = vmatpush3.bf16.msra.mxu1 %v3474_v29  ;;  %2809 = vmatprep.mubr.msk.f32.mxu1 %vm3312_vm0, %v3313_v1 }
0x116a   :  { %2974 = vmatprep.subr.bf16.mxu1 %v3311_v0 }
0x116d   :  { %2976 = vmatpush3.bf16.msra.mxu1 %v3477_v31 }
0x116e   :  { %2983 = vmatprep.subr.bf16.mxu1 %v3311_v0 }
0x1233   :  { %v1720_v4 = vpop.f32.mrb[10].mxu1 }
0x1234   :  { %v3000_v6 = vadd.f32 %v3516_v42, %v1720_v4  ;;  %v2767_v8 = vpop.f32.mrb[11].mxu1 }
0x1236   :  { %v2431_v9 = vmul.f32 -1.442695, %v3000_v6 }
0x1238   :  { %3120 = vpow2.f32 %v2431_v9 }
0x123b   :  { %v1892_v11 = vpop.f32.mrb[12].mxu1 }
0x123c   :  { %v1893_v12 = vadd.f32 %v1892_v11, %v1825_v10  ;;  %v2789_v13 = vpop.f32.mrb[13].mxu1 }
0x123e   :  { %v2434_v29 = vmul.f32 -1.442695, %v1893_v12 }
0x1240   :  { %3122 = vpow2.f32 %v2434_v29 }
0x1241   :  { %3124 = vtanh.f32 %v3000_v6 }
0x1242   :  { %v3121_v14 = vpop.eup %3120 }
0x1243   :  { %v1727_v15 = vadd.f32 1.0, %v3121_v14 }
0x1245   :  { %3126 = vrcp.f32 %v1727_v15 }
0x1246   :  { %3128 = vtanh.f32 %v1893_v12 }
0x124a   :  { %v3123_v16 = vpop.eup %3122 }
0x124b   :  { %v1899_v31 = vadd.f32 1.0, %v3123_v16  ;;  %v3125_v18 = vpop.eup %3124 }
0x124d   :  { %3130 = vrcp.f32 %v1899_v31 }
0x124f   :  { %v3127_v19 = vpop.eup %3126 }
0x1250   :  { %v1731_v20 = vsel %vm3463_vm3, %v3125_v18, %v3127_v19  ;;  %v3129_v21 = vpop.eup %3128 }
0x1251   :  { %1734 = vrot.lane.b32.xlu0 %v1731_v20, %s3314_s5  ;;  %v1732_v28 = vmul.f32 %v1731_v20, %v3695_v54 }
0x1257   :  { %v3131_v22 = vpop.eup %3130 }
0x1258   :  { %v1903_v23 = vsel %vm3463_vm3, %v3129_v21, %v3131_v22 }
0x1259   :  { %1906 = vrot.lane.b32.xlu1 %v1903_v23, %s3314_s5  ;;  %v1904_v33 = vmul.f32 %v1903_v23, %v3699_v57 }
0x12c3   :  { %v1735_v24 = vpop.permute.xlu0 %1734 }
0x12c4   :  { %v1737_v25 = vmul.f32 %v1735_v24, %v1731_v20 }
0x12c6   :  { %1739 = vrot.lane.b32.xlu0 %v1737_v25, %s3315_s13 }
0x12cb   :  { %v1907_v26 = vpop.permute.xlu1 %1906 }
0x12cc   :  { %v1909_v27 = vmul.f32 %v1907_v26, %v1903_v23 }
0x12ce   :  { %1911 = vrot.lane.b32.xlu1 %v1909_v27, %s3315_s13 }
0x1338   :  { %v1740_v30 = vpop.permute.xlu0 %1739 }
0x1339   :  { %v3737_v32 = vadd.f32 %v1740_v30, %v1732_v28 }
0x133b   :  { %3132 = vtanh.f32 %v3737_v32 }
0x1340   :  { %v1912_v35 = vpop.permute.xlu1 %1911 }
0x1341   :  { %v3741_v36 = vadd.f32 %v1912_v35, %v1904_v33  ;;  %v2293_v33 = vld [vmem:[#allocation10] sm:$0xff]  ;;  %v2294_v35 = vld [vmem:[#allocation10 + $0x8] sm:$0xff] }
0x1343   :  { %3134 = vtanh.f32 %v3741_v36 }
0x1345   :  { %v3133_v37 = vpop.eup %3132 }
0x1346   :  { %1745 = vrot.lane.b32.xlu0 %v3133_v37, %s3314_s5  ;;  %v2990_v37 = vpack.c.bf16 %v2294_v35, %v2293_v33 }
0x134d   :  { %v3135_v39 = vpop.eup %3134 }
0x134e   :  { %1917 = vrot.lane.b32.xlu1 %v3135_v39, %s3314_s5  ;;  %v2296_v39 = vld [vmem:[#allocation10 + $0x18] sm:$0xff] }
0x13b8   :  { %v1746_v40 = vpop.permute.xlu0 %1745 }
0x13b9   :  { %v1748_v41 = vmul.f32 %v1746_v40, %v1731_v20 }
0x13bb   :  { %1750 = vrot.lane.b32.xlu0 %v1748_v41, %s3315_s13 }
0x13c0   :  { %v1918_v43 = vpop.permute.xlu1 %1917 }
0x13c1   :  { %v1920_v44 = vmul.f32 %v1918_v43, %v1903_v23 }
0x13c3   :  { %1922 = vrot.lane.b32.xlu1 %v1920_v44, %s3315_s13 }
0x142d   :  { %v1751_v45 = vpop.permute.xlu0 %1750 }
0x142e   :  { %2777 = vmatmul.mubr.msk.f32.vlgmr.msra.gmra.mrb[12].mxu0 %vm119_vm4, %v1751_v45  ;;  %v2442_v45 = vld [vmem:[%s3817_s6] ss:$0 sm:$0xff] }
0x142f   :  { %2967 = vmatpush3.bf16.msra.mxu0 %v3483_v34  ;;  %2798 = vmatprep.mubr.msk.f32.mxu0 %vm3312_vm0, %v3313_v1 }
0x1430   :  { %2968 = vmatprep.subr.bf16.mxu0 %v3311_v0 }
0x1433   :  { %2970 = vmatpush3.bf16.msra.mxu0 %v3491_v38 }
0x1434   :  { %2977 = vmatprep.subr.bf16.mxu0 %v3311_v0 }
0x1435   :  { %v1923_v46 = vpop.permute.xlu1 %1922 }
0x1436   :  { %2799 = vmatmul.mubr.msk.f32.vlgmr.msra.gmra.mrb[12].mxu0 %vm119_vm4, %v1923_v46 }
0x1437   :  { %2979 = vmatpush3.bf16.msra.mxu0 %v3452_v5  ;;  %2820 = vmatprep.mubr.msk.f32.mxu0 %vm3312_vm0, %v3313_v1  ;;  %v2097_v5 = vld [vmem:[#allocation2 + $0x38] sm:$0xff] }
0x1438   :  { %2980 = vmatprep.subr.bf16.mxu0 %v3311_v0 }
0x143b   :  { %2982 = vmatpush3.bf16.msra.mxu0 %v3455_v7 }
0x143c   :  { %2989 = vmatprep.subr.bf16.mxu0 %v3311_v0 }
0x143e   :  { %2821 = vmatmul.mubr.msk.f32.vlgmr.msra.gmra.mrb[14].mxu0 %vm119_vm4, %v1923_v46 }
0x143f   :  { %2842 = vmatprep.mubr.msk.f32.mxu0 %vm3312_vm0, %v3313_v1  ;;  %2991 = vmatpush3.bf16.msra.mxu0 %v2990_v37 }
0x1440   :  { %2992 = vmatprep.subr.bf16.mxu0 %v3311_v0 }
0x1509   :  { %v1992_v47 = vpop.f32.mrb[12].mxu0 }
0x150a   :  { %v3001_v48 = vadd.f32 %v3516_v42, %v1992_v47  ;;  %v2800_v49 = vpop.f32.mrb[13].mxu0 }
0x150c   :  { %v2436_v50 = vmul.f32 -1.442695, %v3001_v48 }
0x150e   :  { %3136 = vpow2.f32 %v2436_v50 }
0x1511   :  { %v2164_v51 = vpop.f32.mrb[14].mxu0 }
0x1512   :  { %v2165_v52 = vadd.f32 %v2164_v51, %v2097_v5  ;;  %v2822_v53 = vpop.f32.mrb[15].mxu0 }
0x1514   :  { %v2439_v54 = vmul.f32 -1.442695, %v2165_v52 }
0x1516   :  { %3138 = vpow2.f32 %v2439_v54 }
0x1517   :  { %3140 = vtanh.f32 %v3001_v48 }
0x1518   :  { %v3137_v7 = vpop.eup %3136 }
0x1519   :  { %v1999_v55 = vadd.f32 1.0, %v3137_v7 }
0x151b   :  { %3142 = vrcp.f32 %v1999_v55 }
0x151c   :  { %3144 = vtanh.f32 %v2165_v52 }
0x1520   :  { %v3139_v56 = vpop.eup %3138 }
0x1521   :  { %v2171_v57 = vadd.f32 1.0, %v3139_v56  ;;  %v3141_v58 = vpop.eup %3140 }
0x1523   :  { %3146 = vrcp.f32 %v2171_v57 }
0x1525   :  { %v3143_v59 = vpop.eup %3142 }
0x1526   :  { %v2003_v60 = vsel %vm3463_vm3, %v3141_v58, %v3143_v59  ;;  %v3145_v61 = vpop.eup %3144 }
0x1527   :  { %2006 = vrot.lane.b32.xlu0 %v2003_v60, %s3314_s5  ;;  %v2004_v8 = vmul.f32 %v2003_v60, %v3737_v32 }
0x152d   :  { %v3147_v62 = vpop.eup %3146 }
0x152e   :  { %v2175_v63 = vsel %vm3463_vm3, %v3145_v61, %v3147_v62 }
0x152f   :  { %2178 = vrot.lane.b32.xlu1 %v2175_v63, %s3314_s5  ;;  %v2176_v11 = vmul.f32 %v2175_v63, %v3741_v36  ;;  %v2295_v36 = vld [vmem:[#allocation10 + $0x10] sm:$0xff] }
0x1530   :  { %v2993_v40 = vpack.c.bf16 %v2296_v39, %v2295_v36 }
0x1532   :  { %2994 = vmatpush3.bf16.msra.mxu0 %v2993_v40 }
0x1599   :  { %v2007_v2 = vpop.permute.xlu0 %2006 }
0x159a   :  { %v2009_v3 = vmul.f32 %v2007_v2, %v2003_v60 }
0x159c   :  { %2011 = vrot.lane.b32.xlu0 %v2009_v3, %s3315_s13 }
0x15a1   :  { %v2179_v4 = vpop.permute.xlu1 %2178 }
0x15a2   :  { %v2181_v6 = vmul.f32 %v2179_v4, %v2175_v63 }
0x15a4   :  { %2183 = vrot.lane.b32.xlu1 %v2181_v6, %s3315_s13 }
0x160e   :  { %v2012_v9 = vpop.permute.xlu0 %2011 }
0x160f   :  { %v2014_v10 = vadd.f32 %v2012_v9, %v2004_v8 }
0x1611   :  { %3148 = vtanh.f32 %v2014_v10 }
0x1616   :  { %v2184_v12 = vpop.permute.xlu1 %2183 }
0x1617   :  { %v2186_v13 = vadd.f32 %v2184_v12, %v2176_v11 }
0x1619   :  { %3150 = vtanh.f32 %v2186_v13 }
0x161b   :  { %v3149_v29 = vpop.eup %3148 }
0x161c   :  { %2017 = vrot.lane.b32.xlu0 %v3149_v29, %s3314_s5 }
0x1623   :  { %v3151_v14 = vpop.eup %3150 }
0x1624   :  { %2189 = vrot.lane.b32.xlu1 %v3151_v14, %s3314_s5 }
0x168e   :  { %v2018_v15 = vpop.permute.xlu0 %2017 }
0x168f   :  { %v2020_v16 = vmul.f32 %v2018_v15, %v2003_v60 }
0x1691   :  { %2022 = vrot.lane.b32.xlu0 %v2020_v16, %s3315_s13 }
0x1696   :  { %v2190_v31 = vpop.permute.xlu1 %2189 }
0x1697   :  { %v2192_v18 = vmul.f32 %v2190_v31, %v2175_v63 }
0x1699   :  { %2194 = vrot.lane.b32.xlu1 %v2192_v18, %s3315_s13 }
0x1703   :  { %v2023_v19 = vpop.permute.xlu0 %2022 }
0x1704   :  { %2810 = vmatmul.mubr.msk.f32.vlgmr.msra.gmra.mrb[14].mxu1 %vm119_vm4, %v2023_v19 }
0x1705   :  { %2985 = vmatpush3.bf16.msra.mxu1 %v3483_v34  ;;  %2831 = vmatprep.mubr.msk.f32.mxu1 %vm3312_vm0, %v3313_v1 }
0x1706   :  { %2986 = vmatprep.subr.bf16.mxu1 %v3311_v0 }
0x1709   :  { %2988 = vmatpush3.bf16.msra.mxu1 %v3491_v38 }
0x170b   :  { %v2195_v20 = vpop.permute.xlu1 %2194 }
0x170c   :  { %2832 = vmatmul.mubr.msk.f32.vlgmr.msra.gmra.mrb[14].mxu1 %vm119_vm4, %v2195_v20 }
0x17df   :  { %v2264_v21 = vpop.f32.mrb[14].mxu1 }
0x17e0   :  { %v3002_v22 = vadd.f32 %v3516_v42, %v2264_v21  ;;  %v2833_v23 = vpop.f32.mrb[15].mxu1 }
0x17e2   :  { %v2441_v24 = vmul.f32 -1.442695, %v3002_v22 }
0x17e4   :  { %3152 = vpow2.f32 %v2441_v24 }
0x17e5   :  { %3154 = vtanh.f32 %v3002_v22 }
0x17ee   :  { %v3153_v25 = vpop.eup %3152 }
0x17ef   :  { %v2271_v26 = vadd.f32 1.0, %v3153_v25  ;;  %v3155_v34 = vpop.eup %3154 }
0x17f1   :  { %3156 = vrcp.f32 %v2271_v26 }
0x17fb   :  { %v3157_v27 = vpop.eup %3156 }
0x17fc   :  { %v2275_v1 = vsel %vm3463_vm3, %v3155_v34, %v3157_v27 }
0x17fd   :  { %2278 = vrot.lane.b32.xlu0 %v2275_v1, %s3314_s5  ;;  %v2276_v30 = vmul.f32 %v2275_v1, %v2014_v10 }
0x186f   :  { %v2279_v38 = vpop.permute.xlu0 %2278 }
0x1870   :  { %v2281_v28 = vmul.f32 %v2279_v38, %v2275_v1 }
0x1872   :  { %2283 = vrot.lane.b32.xlu1 %v2281_v28, %s3315_s13 }
0x18e4   :  { %v2284_v42 = vpop.permute.xlu1 %2283 }
0x18e5   :  { %v2286_v32 = vadd.f32 %v2284_v42, %v2276_v30 }
0x18e7   :  { %3158 = vtanh.f32 %v2286_v32 }
0x18f1   :  { %v3159_v17 = vpop.eup %3158 }
0x18f2   :  { %2289 = vrot.lane.b32.xlu0 %v3159_v17, %s3314_s5 }
0x1964   :  { %v2290_v41 = vpop.permute.xlu0 %2289 }
0x1965   :  { %v2292_v43 = vmul.f32 %v2290_v41, %v2275_v1 }
0x1967   :  { %2305 = vrot.lane.b32.xlu1 %v2292_v43, %s3315_s13 }
0x19d9   :  { %v2306_v44 = vpop.permute.xlu1 %2305 }
0x19da   :  { %2843 = vmatmul.mubr.msk.f32.vlgmr.msra.gmra.mrb[16].mxu0 %vm119_vm4, %v2306_v44 }
0x1aad   :  { %v2375_v46 = vpop.f32.mrb[16].mxu0 }
0x1aae   :  { %v2376_v47 = vadd.f32 %v2442_v45, %v2375_v46  ;;  %v2844_v48 = vpop.f32.mrb[17].mxu0 }
0x1ab0   :  { %v2444_v49 = vmul.f32 -1.442695, %v2376_v47 }
0x1ab2   :  { %3160 = vpow2.f32 %v2444_v49 }
0x1abc   :  { %v3161_v0 = vpop.eup %3160 }
0x1abd   :  { %v2382_v50 = vadd.f32 1.0, %v3161_v0 }
0x1abf   :  { %3162 = vrcp.f32 %v2382_v50 }
0x1ac9   :  { %v3163_v5 = vpop.eup %3162 }
0x1aca   :  { %2385 = vst [vmem:[#allocation11] sm:$0xff] %v3163_v5 }
0x1acb   :  { %3285 = shalt.err (!%p3282_p2)
}
0x1acc   :  { %s3286_s21 = scalar_lea.hbm %s3818_s7, 128 }
0x1acd   :  { %p3287_p3 = scmp.ne.s32.totalorder %s3818_s7, %s3286_s21  ;;  %p3290_p4 = scmp.lt.u32.totalorder %s3286_s21, %s3818_s7 }
0x1acf   :  { %p3292_p5 = pnand %p3290_p4, %p3287_p3 }
0x1ad1   :  { %3295 = shalt.err (!%p3292_p5)
}
0x1ad2   :  { %2395 = dma.vmem_to_hbm [thread:$0]  %s2393_s18, 128, %s3818_s7, [#allocation4]  }
0x1ad3   :  { %3302 = dma.done.wait [#allocation4], 128  }
0x1ad4   :  { %3303 = vsyncadd [#allocation4], 4294967168 }
0x1ad5   :  { %2399 = vsyncpa [#allocation3], 1 }
0x1ad6   :  { %2400 = vsyncpa [#allocation6], 1 }
0x1ad7   :  { %2401 = vsyncpa [#allocation9], 1 }
0x1ad8   :  { %2402 = vsyncpa [#allocation4], 1 }

</bundles_post_ra>
